<compile_context>
chip_gen: v5e
topology: v5e:2x2
jax: 0.10.0
libtpu: 0.0.40
codegen_flags: <defaults>
</compile_context>

<pallas_src>
import functools
import math

import jax
import jax.numpy as jnp
from jax import lax
from jax.experimental import pallas as pl
from jax.experimental.pallas import tpu as pltpu


# ---------------------------------------------------------------------------
# shared math (used by the kernel AND the pure-JAX references)
# ---------------------------------------------------------------------------
def _attention_weights(scores, mode, recip):
    """Attention-weight post-processing, mirroring the PyTorch `match`."""
    sigmoid_domain = 5.0
    if mode == "softmax":
        return jax.nn.softmax(scores, axis=-1)

    smax = jnp.max(scores, axis=-1, keepdims=True)
    smin = jnp.min(scores, axis=-1, keepdims=True)
    # NOTE(intentional deviation): an unguarded PyTorch min-max normalization
    # would produce 0/0 = NaN for a constant score row; the epsilon keeps it
    # finite instead.
    inv_range = recip(jnp.maximum(smax - smin, 1e-20))
    norm = (scores - smin) * inv_range
    sig = jax.nn.sigmoid(norm * (2.0 * sigmoid_domain) - sigmoid_domain)
    if mode == "sigmoid":
        return sig

    sm = jnp.softmax(norm, axis=-1) if False else jax.nn.softmax(norm, axis=-1)
    nmax = jnp.max(norm, axis=-1, keepdims=True)
    if mode == "overtaking-sigmoid":
        # Exact arithmetic gives nmax == 1 (so softmax_sel == 0); the clamp
        # guarantees approx-reciprocal noise can never inject a negative
        # softmax weight.
        softmax_sel = jnp.clip(1.0 - nmax, 0.0, 1.0)
    else:  # "overtaking-sigmoid-tuned"
        softmax_sel = jax.nn.sigmoid(
            (1.0 - nmax) * (2.0 * sigmoid_domain) + sigmoid_domain)
    return softmax_sel * sm + (1.0 - softmax_sel) * sig


def _fold_and_stack(gamma, beta, wq, wk, wv, inv_scale):
    """Fold the LayerNorm affine AND the 1/sqrt(E) score scale into the
    stacked QKV projection.

    q = W (z*gamma + beta) = (W*gamma) z + W beta, so we ship W' = W*gamma
    plus a per-output-channel bias W@beta; the query rows additionally carry
    the 1/sqrt(E) factor so the score matmul needs no post-scale.
    Returns (E, P) weight (matmul RHS) and (1, P) bias, P = H*(2A + E).
    """
    H, A, E = wq.shape
    wq2 = wq.reshape(H * A, E) * inv_scale       # fold score scale into Q
    wk2 = wk.reshape(H * A, E)
    wv2 = wv.reshape(H * E, E)
    w_stack = jnp.concatenate([wq2 * gamma, wk2 * gamma, wv2 * gamma], axis=0)
    b_stack = jnp.concatenate([wq2 @ beta, wk2 @ beta, wv2 @ beta], axis=0)
    return w_stack.T, b_stack[None, :]           # (E, P), (1, P)


# ---------------------------------------------------------------------------
# Pallas kernel (single grid step, whole problem in one body)
# ---------------------------------------------------------------------------
def _eru_attention_kernel(tok_ref, table_ref, w_ref, b_ref, o_ref, *,
                          eps, mode, batch, seq, heads, attn_dim, emb_dim,
                          approx_recip):
    # tok_ref:   (B*S,)     int32 token ids in SMEM (scalar prefetch)
    # table_ref: (V, E)     f32 embedding table (constant VMEM block)
    # w_ref:     (E, P)     fused/folded QKV weights, P = H*(2A+E)
    # b_ref:     (1, P)     f32 folded bias
    # o_ref:     (B, H, S, E) output in module layout
    B, S, H, A, E = batch, seq, heads, attn_dim, emb_dim
    BS = B * S

    # ---- in-kernel embedding gather (B*S dynamic row loads, fully unrolled)
    rows = []
    for i in range(BS):
        tok = tok_ref[i]
        rows.append(table_ref[pl.ds(tok, 1), :])          # (1, E)
    x = jnp.concatenate(rows, axis=0).astype(jnp.float32)  # (BS, E)

    # ---- single-pass LayerNorm stats (affine folded into w_ref / b_ref) ----
    mean = jnp.mean(x, axis=-1, keepdims=True)
    mean_sq = jnp.mean(x * x, axis=-1, keepdims=True)
    var = mean_sq - mean * mean
    z = (x - mean) * lax.rsqrt(var + eps)                  # (BS, E) f32

    # ---- ONE fused QKV projection for every batch element and head ----
    w = w_ref[...]
    proj = jnp.dot(z.astype(w.dtype), w,
                   preferred_element_type=jnp.float32) + b_ref[...]  # (BS, P)

    if approx_recip:
        recip = lambda t: pl.reciprocal(t, approx=True)    # EUP slot, ~free
    else:
        recip = lambda t: 1.0 / t

    # ---- batch all (b, h) attention blocks together ----
    qk_off, v_off = H * A, 2 * H * A
    q_parts, k_parts, v_parts = [], [], []
    for b in range(B):
        pb = proj[b * S:(b + 1) * S]                       # (S, P) static slice
        for h in range(H):
            q_parts.append(pb[:, h * A:(h + 1) * A])
            k_parts.append(pb[:, qk_off + h * A:qk_off + (h + 1) * A])
            v_parts.append(pb[:, v_off + h * E:v_off + (h + 1) * E])
    q = jnp.stack(q_parts)                                 # (B*H, S, A)
    k = jnp.stack(k_parts)                                 # (B*H, S, A)
    v = jnp.stack(v_parts)                                 # (B*H, S, E)

    # score scale already folded into the Q weights -> no "* inv_scale" here
    scores = jnp.einsum("nsa,nta->nst", q, k,
                        preferred_element_type=jnp.float32)  # (B*H, S, S)
    aw = _attention_weights(scores, mode, recip)             # one batched chain
    out = jnp.einsum("nst,ntv->nsv", aw, v,
                     preferred_element_type=jnp.float32)     # (B*H, S, E)

    # module layout (B, H, S, E) written directly -> no wrapper transpose
    o_ref[...] = out.reshape(B, H, S, E).astype(o_ref.dtype)


def eru_self_attention(x_tokens, emb_table, gamma, beta, wq, wk, wv,
                       mode="overtaking-sigmoid", fast_math=False):
    """Forward pass of EruSelfAttentionModel. Returns (B, H, S, E)."""
    B, S = x_tokens.shape
    V, E = emb_table.shape
    H, A, _ = wq.shape
    assert wv.shape == (H, E, E)
    P = H * (2 * A + E)

    inv_scale = 1.0 / math.sqrt(E)
    w_t, b_stack = _fold_and_stack(gamma, beta, wq, wk, wv, inv_scale)
    matmul_dtype = jnp.bfloat16 if fast_math else jnp.float32
    w_t = w_t.astype(matmul_dtype)
    emb_table_f32 = emb_table.astype(jnp.float32)
    tok_flat = x_tokens.reshape(-1).astype(jnp.int32)

    kernel = functools.partial(
        _eru_attention_kernel,
        eps=1e-5, mode=mode, batch=B, seq=S, heads=H, attn_dim=A, emb_dim=E,
        approx_recip=fast_math)

    flops = 2 * B * S * E * P + 2 * B * H * S * S * (A + E)
    bytes_accessed = (tok_flat.size * 4 + emb_table_f32.size * 4
                      + w_t.size * w_t.dtype.itemsize + b_stack.size * 4
                      + B * H * S * E * 4)

    out = pl.pallas_call(
        kernel,
        out_shape=jax.ShapeDtypeStruct((B, H, S, E), jnp.float32),
        grid_spec=pltpu.PrefetchScalarGridSpec(
            num_scalar_prefetch=1,           # token ids -> SMEM
            grid=(1,),                       # single step: whole problem at once
            in_specs=[
                pl.BlockSpec((V, E), lambda i, tok: (0, 0)),      # emb table
                pl.BlockSpec((E, P), lambda i, tok: (0, 0)),      # fused weights
                pl.BlockSpec((1, P), lambda i, tok: (0, 0)),      # folded bias
            ],
            out_specs=pl.BlockSpec((B, H, S, E),
                                   lambda i, tok: (0, 0, 0, 0)),
        ),
        compiler_params=pltpu.CompilerParams(
            dimension_semantics=("arbitrary",)),
        cost_estimate=pl.CostEstimate(
            flops=int(flops),
            transcendentals=int(4 * B * H * S * S),
            bytes_accessed=int(bytes_accessed)),
    )(tok_flat, emb_table_f32, w_t, b_stack)

    return out


# ---------------------------------------------------------------------------
# pure-JAX references
# ---------------------------------------------------------------------------
def _reference(x_tokens, emb_table, gamma, beta, wq, wk, wv, mode):
    """f32 mirror of the PyTorch forward."""
    E = emb_table.shape[1]
    hp = lax.Precision.HIGHEST
    emb = emb_table[x_tokens].astype(jnp.float32)
    mean = jnp.mean(emb, -1, keepdims=True)
    var = jnp.mean((emb - mean) ** 2, -1, keepdims=True)
    xn = (emb - mean) / jnp.sqrt(var + 1e-5) * gamma + beta
    q = jnp.einsum("hae,bse->bhsa", wq, xn, precision=hp)
    k = jnp.einsum("hae,bse->bhsa", wk, xn, precision=hp)
    v = jnp.einsum("hve,bse->bhsv", wv, xn, precision=hp)
    scores = jnp.einsum("bhsa,bhta->bhst", q, k, precision=hp) / math.sqrt(E)
    w = _attention_weights(scores, mode, lambda t: 1.0 / t)
    return jnp.einsum("bhst,bhtv->bhsv", w, v, precision=hp)


def _fast_ref(x_tokens, emb_table, gamma, beta, wq, wk, wv, mode, matmul_dtype):
    """Mirror of the kernel's fast-math pipeline (fold + low-precision proj)."""
    H, A, E = wq.shape
    B, S = x_tokens.shape
    hp = lax.Precision.HIGHEST
    w_t, b = _fold_and_stack(gamma, beta, wq, wk, wv, 1.0 / math.sqrt(E))
    emb = emb_table[x_tokens].astype(jnp.float32)
    mean = jnp.mean(emb, -1, keepdims=True)
    mean_sq = jnp.mean(emb * emb, -1, keepdims=True)
    var = mean_sq - mean * mean
    z = (emb - mean) * lax.rsqrt(var + 1e-5)
    proj = jnp.einsum("bse,ep->bsp", z.astype(matmul_dtype),
                      w_t.astype(matmul_dtype),
                      preferred_element_type=jnp.float32) + b
    qk = H * A
    q = proj[..., :qk].reshape(B, S, H, A).transpose(0, 2, 1, 3)
    k = proj[..., qk:2 * qk].reshape(B, S, H, A).transpose(0, 2, 1, 3)
    v = proj[..., 2 * qk:].reshape(B, S, H, E).transpose(0, 2, 1, 3)
    scores = jnp.einsum("bhsa,bhta->bhst", q, k, precision=hp)  # scale folded
    w = _attention_weights(scores, mode, lambda t: 1.0 / t)
    return jnp.einsum("bhst,bhtv->bhsv", w, v, precision=hp)


# ---------------------------------------------------------------------------
if __name__ == "__main__":
    vocab_size, embedding_dim, attention_dim, c_heads = 50, 32, 16, 4
    batch, seq = 2, 8

    key = jax.random.PRNGKey(0)
    k_tok, k_emb, k_g, k_b, k_q, k_k, k_v = jax.random.split(key, 7)

    x_tokens = jax.random.randint(k_tok, (batch, seq), 0, vocab_size)
    emb_table = jax.random.normal(k_emb, (vocab_size, embedding_dim), jnp.float32)
    # non-trivial LayerNorm affine to exercise the gamma/beta weight folding
    gamma = 1.0 + 0.1 * jax.random.normal(k_g, (embedding_dim,), jnp.float32)
    beta = 0.1 * jax.random.normal(k_b, (embedding_dim,), jnp.float32)
    wq = jax.random.uniform(k_q, (c_heads, attention_dim, embedding_dim), jnp.float32)
    wk = jax.random.uniform(k_k, (c_heads, attention_dim, embedding_dim), jnp.float32)
    wv = jax.random.uniform(k_v, (c_heads, embedding_dim, embedding_dim), jnp.float32)

    # 1) default / exact config (f32 MXU operands + exact reciprocal): must
    #    match the module closely, for every attention_weights_mode.
    for mode in ("overtaking-sigmoid", "overtaking-sigmoid-tuned",
                 "sigmoid", "softmax"):
        out = eru_self_attention(x_tokens, emb_table, gamma, beta, wq, wk, wv,
                                 mode=mode, fast_math=False)
        out = jax.block_until_ready(out)
        ref = _reference(x_tokens, emb_table, gamma, beta, wq, wk, wv, mode)
        assert out.shape == (batch, c_heads, seq, embedding_dim)
        assert jnp.allclose(out, ref, rtol=1e-3, atol=1e-3), f"mismatch ({mode})"

    # 2) explicit opt-in fast config: bf16 fused projection + EUP approx
    #    reciprocal.  Checked against a pure-JAX mirror of the same
    #    low-precision pipeline, plus a finiteness check.
    mode = "overtaking-sigmoid"
    out_fast = jax.block_until_ready(
        eru_self_attention(x_tokens, emb_table, gamma, beta, wq, wk, wv,
                           mode=mode, fast_math=True))
    ref_fast = _fast_ref(x_tokens, emb_table, gamma, beta, wq, wk, wv, mode,
                         jnp.bfloat16)
    assert out_fast.shape == (batch, c_heads, seq, embedding_dim)
    assert jnp.all(jnp.isfinite(out_fast))
    assert jnp.allclose(out_fast, ref_fast, rtol=5e-2, atol=1e-1), "fast-math mismatch"

    print("KERNEL_OK")
</pallas_src>

<mosaic_0001>
module attributes {stable_mosaic.version = 11 : i64} {
  func.func @_eru_attention_kernel(%arg0: i32, %arg1: memref<16xi32, #tpu.memory_space<smem>>, %arg2: memref<50x32xf32, #tpu.memory_space<vmem>>, %arg3: memref<32x256xf32, #tpu.memory_space<vmem>>, %arg4: memref<1x256xf32, #tpu.memory_space<vmem>>, %arg5: memref<2x4x8x32xf32, #tpu.memory_space<vmem>>) attributes {dimension_semantics = [#tpu.dimension_semantics<arbitrary>], iteration_bounds = array<i64: 1>, scalar_prefetch = 1 : i64, scratch_operands = 0 : i64, tpu.core_type = #tpu.core_type<tc>, window_params = [{pipeline_mode = #tpu.pipeline_mode<synchronous>, transform_indices = @transform_0, window_bounds = array<i64: 50, 32>}, {pipeline_mode = #tpu.pipeline_mode<synchronous>, transform_indices = @transform_1, window_bounds = array<i64: 32, 256>}, {pipeline_mode = #tpu.pipeline_mode<synchronous>, transform_indices = @transform_2, window_bounds = array<i64: 1, 256>}, {pipeline_mode = #tpu.pipeline_mode<synchronous>, transform_indices = @transform_3, window_bounds = array<i64: 2, 4, 8, 32>}]} {
    %c0 = arith.constant 0 : index
    %0 = memref.load %arg1[%c0] : memref<16xi32, #tpu.memory_space<smem>>
    %1 = arith.index_cast %0 : i32 to index
    %c0_0 = arith.constant 0 : index
    %2 = vector.load %arg2[%1, %c0_0] : memref<50x32xf32, #tpu.memory_space<vmem>>, vector<1x32xf32>
    %c1 = arith.constant 1 : index
    %3 = memref.load %arg1[%c1] : memref<16xi32, #tpu.memory_space<smem>>
    %4 = arith.index_cast %3 : i32 to index
    %c0_1 = arith.constant 0 : index
    %5 = vector.load %arg2[%4, %c0_1] : memref<50x32xf32, #tpu.memory_space<vmem>>, vector<1x32xf32>
    %c2 = arith.constant 2 : index
    %6 = memref.load %arg1[%c2] : memref<16xi32, #tpu.memory_space<smem>>
    %7 = arith.index_cast %6 : i32 to index
    %c0_2 = arith.constant 0 : index
    %8 = vector.load %arg2[%7, %c0_2] : memref<50x32xf32, #tpu.memory_space<vmem>>, vector<1x32xf32>
    %c3 = arith.constant 3 : index
    %9 = memref.load %arg1[%c3] : memref<16xi32, #tpu.memory_space<smem>>
    %10 = arith.index_cast %9 : i32 to index
    %c0_3 = arith.constant 0 : index
    %11 = vector.load %arg2[%10, %c0_3] : memref<50x32xf32, #tpu.memory_space<vmem>>, vector<1x32xf32>
    %c4 = arith.constant 4 : index
    %12 = memref.load %arg1[%c4] : memref<16xi32, #tpu.memory_space<smem>>
    %13 = arith.index_cast %12 : i32 to index
    %c0_4 = arith.constant 0 : index
    %14 = vector.load %arg2[%13, %c0_4] : memref<50x32xf32, #tpu.memory_space<vmem>>, vector<1x32xf32>
    %c5 = arith.constant 5 : index
    %15 = memref.load %arg1[%c5] : memref<16xi32, #tpu.memory_space<smem>>
    %16 = arith.index_cast %15 : i32 to index
    %c0_5 = arith.constant 0 : index
    %17 = vector.load %arg2[%16, %c0_5] : memref<50x32xf32, #tpu.memory_space<vmem>>, vector<1x32xf32>
    %c6 = arith.constant 6 : index
    %18 = memref.load %arg1[%c6] : memref<16xi32, #tpu.memory_space<smem>>
    %19 = arith.index_cast %18 : i32 to index
    %c0_6 = arith.constant 0 : index
    %20 = vector.load %arg2[%19, %c0_6] : memref<50x32xf32, #tpu.memory_space<vmem>>, vector<1x32xf32>
    %c7 = arith.constant 7 : index
    %21 = memref.load %arg1[%c7] : memref<16xi32, #tpu.memory_space<smem>>
    %22 = arith.index_cast %21 : i32 to index
    %c0_7 = arith.constant 0 : index
    %23 = vector.load %arg2[%22, %c0_7] : memref<50x32xf32, #tpu.memory_space<vmem>>, vector<1x32xf32>
    %c8 = arith.constant 8 : index
    %24 = memref.load %arg1[%c8] : memref<16xi32, #tpu.memory_space<smem>>
    %25 = arith.index_cast %24 : i32 to index
    %c0_8 = arith.constant 0 : index
    %26 = vector.load %arg2[%25, %c0_8] : memref<50x32xf32, #tpu.memory_space<vmem>>, vector<1x32xf32>
    %c9 = arith.constant 9 : index
    %27 = memref.load %arg1[%c9] : memref<16xi32, #tpu.memory_space<smem>>
    %28 = arith.index_cast %27 : i32 to index
    %c0_9 = arith.constant 0 : index
    %29 = vector.load %arg2[%28, %c0_9] : memref<50x32xf32, #tpu.memory_space<vmem>>, vector<1x32xf32>
    %c10 = arith.constant 10 : index
    %30 = memref.load %arg1[%c10] : memref<16xi32, #tpu.memory_space<smem>>
    %31 = arith.index_cast %30 : i32 to index
    %c0_10 = arith.constant 0 : index
    %32 = vector.load %arg2[%31, %c0_10] : memref<50x32xf32, #tpu.memory_space<vmem>>, vector<1x32xf32>
    %c11 = arith.constant 11 : index
    %33 = memref.load %arg1[%c11] : memref<16xi32, #tpu.memory_space<smem>>
    %34 = arith.index_cast %33 : i32 to index
    %c0_11 = arith.constant 0 : index
    %35 = vector.load %arg2[%34, %c0_11] : memref<50x32xf32, #tpu.memory_space<vmem>>, vector<1x32xf32>
    %c12 = arith.constant 12 : index
    %36 = memref.load %arg1[%c12] : memref<16xi32, #tpu.memory_space<smem>>
    %37 = arith.index_cast %36 : i32 to index
    %c0_12 = arith.constant 0 : index
    %38 = vector.load %arg2[%37, %c0_12] : memref<50x32xf32, #tpu.memory_space<vmem>>, vector<1x32xf32>
    %c13 = arith.constant 13 : index
    %39 = memref.load %arg1[%c13] : memref<16xi32, #tpu.memory_space<smem>>
    %40 = arith.index_cast %39 : i32 to index
    %c0_13 = arith.constant 0 : index
    %41 = vector.load %arg2[%40, %c0_13] : memref<50x32xf32, #tpu.memory_space<vmem>>, vector<1x32xf32>
    %c14 = arith.constant 14 : index
    %42 = memref.load %arg1[%c14] : memref<16xi32, #tpu.memory_space<smem>>
    %43 = arith.index_cast %42 : i32 to index
    %c0_14 = arith.constant 0 : index
    %44 = vector.load %arg2[%43, %c0_14] : memref<50x32xf32, #tpu.memory_space<vmem>>, vector<1x32xf32>
    %c15 = arith.constant 15 : index
    %45 = memref.load %arg1[%c15] : memref<16xi32, #tpu.memory_space<smem>>
    %46 = arith.index_cast %45 : i32 to index
    %c0_15 = arith.constant 0 : index
    %47 = vector.load %arg2[%46, %c0_15] : memref<50x32xf32, #tpu.memory_space<vmem>>, vector<1x32xf32>
    %48 = tpu.concatenate %2, %5, %8, %11, %14, %17, %20, %23, %26, %29, %32, %35, %38, %41, %44, %47 in 0 : vector<1x32xf32>, vector<1x32xf32>, vector<1x32xf32>, vector<1x32xf32>, vector<1x32xf32>, vector<1x32xf32>, vector<1x32xf32>, vector<1x32xf32>, vector<1x32xf32>, vector<1x32xf32>, vector<1x32xf32>, vector<1x32xf32>, vector<1x32xf32>, vector<1x32xf32>, vector<1x32xf32>, vector<1x32xf32> -> vector<16x32xf32>
    %cst = arith.constant dense<0.000000e+00> : vector<16xf32>
    %49 = vector.multi_reduction <add>, %48, %cst [1] : vector<16x32xf32> to vector<16xf32>
    %50 = vector.shape_cast %49 : vector<16xf32> to vector<16x1xf32>
    %cst_16 = arith.constant 3.200000e+01 : f32
    %51 = vector.broadcast %cst_16 : f32 to vector<16x1xf32>
    %52 = arith.divf %50, %51 : vector<16x1xf32>
    %53 = arith.mulf %48, %48 : vector<16x32xf32>
    %cst_17 = arith.constant dense<0.000000e+00> : vector<16xf32>
    %54 = vector.multi_reduction <add>, %53, %cst_17 [1] : vector<16x32xf32> to vector<16xf32>
    %55 = vector.shape_cast %54 : vector<16xf32> to vector<16x1xf32>
    %cst_18 = arith.constant 3.200000e+01 : f32
    %56 = vector.broadcast %cst_18 : f32 to vector<16x1xf32>
    %57 = arith.divf %55, %56 : vector<16x1xf32>
    %58 = arith.mulf %52, %52 : vector<16x1xf32>
    %59 = arith.subf %57, %58 : vector<16x1xf32>
    %60 = vector.broadcast %52 : vector<16x1xf32> to vector<16x32xf32>
    %61 = arith.subf %48, %60 : vector<16x32xf32>
    %cst_19 = arith.constant 9.99999974E-6 : f32
    %62 = vector.broadcast %cst_19 : f32 to vector<16x1xf32>
    %63 = arith.addf %59, %62 : vector<16x1xf32>
    %64 = math.rsqrt %63 : vector<16x1xf32>
    %65 = vector.broadcast %64 : vector<16x1xf32> to vector<16x32xf32>
    %66 = arith.mulf %61, %65 : vector<16x32xf32>
    %c0_20 = arith.constant 0 : index
    %c0_21 = arith.constant 0 : index
    %67 = vector.load %arg3[%c0_20, %c0_21] : memref<32x256xf32, #tpu.memory_space<vmem>>, vector<32x256xf32>
    %cst_22 = arith.constant dense<0.000000e+00> : vector<16x256xf32>
    %68 = tpu.matmul %66, %67, %cst_22 {dimension_numbers = #tpu.dot_dimension_numbers<[1], [0], [0], [1], [0, 0, 1, 1], [], []>} : vector<16x32xf32>, vector<32x256xf32>, vector<16x256xf32> -> vector<16x256xf32>
    %c0_23 = arith.constant 0 : index
    %c0_24 = arith.constant 0 : index
    %69 = vector.load %arg4[%c0_23, %c0_24] : memref<1x256xf32, #tpu.memory_space<vmem>>, vector<1x256xf32>
    %70 = vector.broadcast %69 : vector<1x256xf32> to vector<16x256xf32>
    %71 = arith.addf %68, %70 : vector<16x256xf32>
    %72 = vector.extract_strided_slice %71 {offsets = [0, 0], sizes = [8, 256], strides = [1, 1]} : vector<16x256xf32> to vector<8x256xf32>
    %73 = vector.extract_strided_slice %72 {offsets = [0, 0], sizes = [8, 16], strides = [1, 1]} : vector<8x256xf32> to vector<8x16xf32>
    %74 = vector.extract_strided_slice %72 {offsets = [0, 64], sizes = [8, 16], strides = [1, 1]} : vector<8x256xf32> to vector<8x16xf32>
    %75 = vector.extract_strided_slice %72 {offsets = [0, 128], sizes = [8, 32], strides = [1, 1]} : vector<8x256xf32> to vector<8x32xf32>
    %76 = vector.extract_strided_slice %72 {offsets = [0, 16], sizes = [8, 16], strides = [1, 1]} : vector<8x256xf32> to vector<8x16xf32>
    %77 = vector.extract_strided_slice %72 {offsets = [0, 80], sizes = [8, 16], strides = [1, 1]} : vector<8x256xf32> to vector<8x16xf32>
    %78 = vector.extract_strided_slice %72 {offsets = [0, 160], sizes = [8, 32], strides = [1, 1]} : vector<8x256xf32> to vector<8x32xf32>
    %79 = vector.extract_strided_slice %72 {offsets = [0, 32], sizes = [8, 16], strides = [1, 1]} : vector<8x256xf32> to vector<8x16xf32>
    %80 = vector.extract_strided_slice %72 {offsets = [0, 96], sizes = [8, 16], strides = [1, 1]} : vector<8x256xf32> to vector<8x16xf32>
    %81 = vector.extract_strided_slice %72 {offsets = [0, 192], sizes = [8, 32], strides = [1, 1]} : vector<8x256xf32> to vector<8x32xf32>
    %82 = vector.extract_strided_slice %72 {offsets = [0, 48], sizes = [8, 16], strides = [1, 1]} : vector<8x256xf32> to vector<8x16xf32>
    %83 = vector.extract_strided_slice %72 {offsets = [0, 112], sizes = [8, 16], strides = [1, 1]} : vector<8x256xf32> to vector<8x16xf32>
    %84 = vector.extract_strided_slice %72 {offsets = [0, 224], sizes = [8, 32], strides = [1, 1]} : vector<8x256xf32> to vector<8x32xf32>
    %85 = vector.extract_strided_slice %71 {offsets = [8, 0], sizes = [8, 256], strides = [1, 1]} : vector<16x256xf32> to vector<8x256xf32>
    %86 = vector.extract_strided_slice %85 {offsets = [0, 0], sizes = [8, 16], strides = [1, 1]} : vector<8x256xf32> to vector<8x16xf32>
    %87 = vector.extract_strided_slice %85 {offsets = [0, 64], sizes = [8, 16], strides = [1, 1]} : vector<8x256xf32> to vector<8x16xf32>
    %88 = vector.extract_strided_slice %85 {offsets = [0, 128], sizes = [8, 32], strides = [1, 1]} : vector<8x256xf32> to vector<8x32xf32>
    %89 = vector.extract_strided_slice %85 {offsets = [0, 16], sizes = [8, 16], strides = [1, 1]} : vector<8x256xf32> to vector<8x16xf32>
    %90 = vector.extract_strided_slice %85 {offsets = [0, 80], sizes = [8, 16], strides = [1, 1]} : vector<8x256xf32> to vector<8x16xf32>
    %91 = vector.extract_strided_slice %85 {offsets = [0, 160], sizes = [8, 32], strides = [1, 1]} : vector<8x256xf32> to vector<8x32xf32>
    %92 = vector.extract_strided_slice %85 {offsets = [0, 32], sizes = [8, 16], strides = [1, 1]} : vector<8x256xf32> to vector<8x16xf32>
    %93 = vector.extract_strided_slice %85 {offsets = [0, 96], sizes = [8, 16], strides = [1, 1]} : vector<8x256xf32> to vector<8x16xf32>
    %94 = vector.extract_strided_slice %85 {offsets = [0, 192], sizes = [8, 32], strides = [1, 1]} : vector<8x256xf32> to vector<8x32xf32>
    %95 = vector.extract_strided_slice %85 {offsets = [0, 48], sizes = [8, 16], strides = [1, 1]} : vector<8x256xf32> to vector<8x16xf32>
    %96 = vector.extract_strided_slice %85 {offsets = [0, 112], sizes = [8, 16], strides = [1, 1]} : vector<8x256xf32> to vector<8x16xf32>
    %97 = vector.extract_strided_slice %85 {offsets = [0, 224], sizes = [8, 32], strides = [1, 1]} : vector<8x256xf32> to vector<8x32xf32>
    %98 = vector.shape_cast %73 : vector<8x16xf32> to vector<1x8x16xf32>
    %99 = vector.shape_cast %76 : vector<8x16xf32> to vector<1x8x16xf32>
    %100 = vector.shape_cast %79 : vector<8x16xf32> to vector<1x8x16xf32>
    %101 = vector.shape_cast %82 : vector<8x16xf32> to vector<1x8x16xf32>
    %102 = vector.shape_cast %86 : vector<8x16xf32> to vector<1x8x16xf32>
    %103 = vector.shape_cast %89 : vector<8x16xf32> to vector<1x8x16xf32>
    %104 = vector.shape_cast %92 : vector<8x16xf32> to vector<1x8x16xf32>
    %105 = vector.shape_cast %95 : vector<8x16xf32> to vector<1x8x16xf32>
    %106 = tpu.concatenate %98, %99, %100, %101, %102, %103, %104, %105 in 0 : vector<1x8x16xf32>, vector<1x8x16xf32>, vector<1x8x16xf32>, vector<1x8x16xf32>, vector<1x8x16xf32>, vector<1x8x16xf32>, vector<1x8x16xf32>, vector<1x8x16xf32> -> vector<8x8x16xf32>
    %107 = vector.shape_cast %74 : vector<8x16xf32> to vector<1x8x16xf32>
    %108 = vector.shape_cast %77 : vector<8x16xf32> to vector<1x8x16xf32>
    %109 = vector.shape_cast %80 : vector<8x16xf32> to vector<1x8x16xf32>
    %110 = vector.shape_cast %83 : vector<8x16xf32> to vector<1x8x16xf32>
    %111 = vector.shape_cast %87 : vector<8x16xf32> to vector<1x8x16xf32>
    %112 = vector.shape_cast %90 : vector<8x16xf32> to vector<1x8x16xf32>
    %113 = vector.shape_cast %93 : vector<8x16xf32> to vector<1x8x16xf32>
    %114 = vector.shape_cast %96 : vector<8x16xf32> to vector<1x8x16xf32>
    %115 = tpu.concatenate %107, %108, %109, %110, %111, %112, %113, %114 in 0 : vector<1x8x16xf32>, vector<1x8x16xf32>, vector<1x8x16xf32>, vector<1x8x16xf32>, vector<1x8x16xf32>, vector<1x8x16xf32>, vector<1x8x16xf32>, vector<1x8x16xf32> -> vector<8x8x16xf32>
    %116 = vector.shape_cast %75 : vector<8x32xf32> to vector<1x8x32xf32>
    %117 = vector.shape_cast %78 : vector<8x32xf32> to vector<1x8x32xf32>
    %118 = vector.shape_cast %81 : vector<8x32xf32> to vector<1x8x32xf32>
    %119 = vector.shape_cast %84 : vector<8x32xf32> to vector<1x8x32xf32>
    %120 = vector.shape_cast %88 : vector<8x32xf32> to vector<1x8x32xf32>
    %121 = vector.shape_cast %91 : vector<8x32xf32> to vector<1x8x32xf32>
    %122 = vector.shape_cast %94 : vector<8x32xf32> to vector<1x8x32xf32>
    %123 = vector.shape_cast %97 : vector<8x32xf32> to vector<1x8x32xf32>
    %124 = tpu.concatenate %116, %117, %118, %119, %120, %121, %122, %123 in 0 : vector<1x8x32xf32>, vector<1x8x32xf32>, vector<1x8x32xf32>, vector<1x8x32xf32>, vector<1x8x32xf32>, vector<1x8x32xf32>, vector<1x8x32xf32>, vector<1x8x32xf32> -> vector<8x8x32xf32>
    "tpu.trace_start"() <{level = 10 : i32, message = "nsa,nta->nst"}> : () -> ()
    %cst_25 = arith.constant dense<0.000000e+00> : vector<8x8x8xf32>
    %125 = tpu.matmul %106, %115, %cst_25 {dimension_numbers = #tpu.dot_dimension_numbers<[2], [2], [1], [1], [0, 0, 0, 1, 1, 1], [0], [0]>} : vector<8x8x16xf32>, vector<8x8x16xf32>, vector<8x8x8xf32> -> vector<8x8x8xf32>
    "tpu.trace_stop"() : () -> ()
    %cst_26 = arith.constant dense<0xFF800000> : vector<8x8xf32>
    %126 = vector.multi_reduction <maximumf>, %125, %cst_26 [2] : vector<8x8x8xf32> to vector<8x8xf32>
    %127 = vector.shape_cast %126 : vector<8x8xf32> to vector<8x8x1xf32>
    %cst_27 = arith.constant dense<0x7F800000> : vector<8x8xf32>
    %128 = vector.multi_reduction <minimumf>, %125, %cst_27 [2] : vector<8x8x8xf32> to vector<8x8xf32>
    %129 = vector.shape_cast %128 : vector<8x8xf32> to vector<8x8x1xf32>
    %130 = arith.subf %127, %129 : vector<8x8x1xf32>
    %cst_28 = arith.constant 9.99999968E-21 : f32
    %131 = vector.broadcast %cst_28 : f32 to vector<8x8x1xf32>
    %132 = arith.maximumf %130, %131 : vector<8x8x1xf32>
    %cst_29 = arith.constant 1.000000e+00 : f32
    %133 = vector.broadcast %cst_29 : f32 to vector<8x8x1xf32>
    %134 = arith.divf %133, %132 : vector<8x8x1xf32>
    %135 = vector.broadcast %129 : vector<8x8x1xf32> to vector<8x8x8xf32>
    %136 = arith.subf %125, %135 : vector<8x8x8xf32>
    %137 = vector.broadcast %134 : vector<8x8x1xf32> to vector<8x8x8xf32>
    %138 = arith.mulf %136, %137 : vector<8x8x8xf32>
    %cst_30 = arith.constant 1.000000e+01 : f32
    %139 = vector.broadcast %cst_30 : f32 to vector<8x8x8xf32>
    %140 = arith.mulf %138, %139 : vector<8x8x8xf32>
    %cst_31 = arith.constant 5.000000e+00 : f32
    %141 = vector.broadcast %cst_31 : f32 to vector<8x8x8xf32>
    %142 = arith.subf %140, %141 : vector<8x8x8xf32>
    %143 = arith.negf %142 : vector<8x8x8xf32>
    %144 = math.exp %143 : vector<8x8x8xf32>
    %cst_32 = arith.constant 1.000000e+00 : f32
    %145 = vector.broadcast %cst_32 : f32 to vector<8x8x8xf32>
    %146 = arith.addf %145, %144 : vector<8x8x8xf32>
    %147 = arith.divf %145, %146 : vector<8x8x8xf32>
    %cst_33 = arith.constant dense<0xFF800000> : vector<8x8xf32>
    %148 = vector.multi_reduction <maximumf>, %138, %cst_33 [2] : vector<8x8x8xf32> to vector<8x8xf32>
    %cst_34 = arith.constant 0xFF800000 : f32
    %149 = vector.broadcast %cst_34 : f32 to vector<8x8xf32>
    %150 = arith.maximumf %149, %148 : vector<8x8xf32>
    %151 = vector.shape_cast %150 : vector<8x8xf32> to vector<8x8x1xf32>
    %152 = vector.broadcast %151 : vector<8x8x1xf32> to vector<8x8x8xf32>
    %153 = arith.subf %138, %152 : vector<8x8x8xf32>
    %154 = math.exp %153 : vector<8x8x8xf32>
    %cst_35 = arith.constant dense<0.000000e+00> : vector<8x8xf32>
    %155 = vector.multi_reduction <add>, %154, %cst_35 [2] : vector<8x8x8xf32> to vector<8x8xf32>
    %156 = vector.shape_cast %155 : vector<8x8xf32> to vector<8x8x1xf32>
    %157 = vector.broadcast %156 : vector<8x8x1xf32> to vector<8x8x8xf32>
    %158 = arith.divf %154, %157 : vector<8x8x8xf32>
    %cst_36 = arith.constant dense<0xFF800000> : vector<8x8xf32>
    %159 = vector.multi_reduction <maximumf>, %138, %cst_36 [2] : vector<8x8x8xf32> to vector<8x8xf32>
    %160 = vector.shape_cast %159 : vector<8x8xf32> to vector<8x8x1xf32>
    %cst_37 = arith.constant 1.000000e+00 : f32
    %161 = vector.broadcast %cst_37 : f32 to vector<8x8x1xf32>
    %162 = arith.subf %161, %160 : vector<8x8x1xf32>
    %cst_38 = arith.constant 0.000000e+00 : f32
    %cst_39 = arith.constant 1.000000e+00 : f32
    %163 = vector.broadcast %cst_38 : f32 to vector<8x8x1xf32>
    %164 = arith.maximumf %163, %162 : vector<8x8x1xf32>
    %165 = vector.broadcast %cst_39 : f32 to vector<8x8x1xf32>
    %166 = arith.minimumf %165, %164 : vector<8x8x1xf32>
    %167 = vector.broadcast %166 : vector<8x8x1xf32> to vector<8x8x8xf32>
    %168 = arith.mulf %167, %158 : vector<8x8x8xf32>
    %cst_40 = arith.constant 1.000000e+00 : f32
    %169 = vector.broadcast %cst_40 : f32 to vector<8x8x1xf32>
    %170 = arith.subf %169, %166 : vector<8x8x1xf32>
    %171 = vector.broadcast %170 : vector<8x8x1xf32> to vector<8x8x8xf32>
    %172 = arith.mulf %171, %147 : vector<8x8x8xf32>
    %173 = arith.addf %168, %172 : vector<8x8x8xf32>
    "tpu.trace_start"() <{level = 10 : i32, message = "nst,ntv->nsv"}> : () -> ()
    %cst_41 = arith.constant dense<0.000000e+00> : vector<8x8x32xf32>
    %174 = tpu.matmul %173, %124, %cst_41 {dimension_numbers = #tpu.dot_dimension_numbers<[2], [1], [1], [2], [0, 0, 0, 1, 1, 2], [0], [0]>} : vector<8x8x8xf32>, vector<8x8x32xf32>, vector<8x8x32xf32> -> vector<8x8x32xf32>
    "tpu.trace_stop"() : () -> ()
    %175 = vector.shape_cast %174 : vector<8x8x32xf32> to vector<2x4x8x32xf32>
    %c0_42 = arith.constant 0 : index
    %c0_43 = arith.constant 0 : index
    %c0_44 = arith.constant 0 : index
    %c0_45 = arith.constant 0 : index
    %176 = vector.load %arg5[%c0_42, %c0_43, %c0_44, %c0_45] : memref<2x4x8x32xf32, #tpu.memory_space<vmem>>, vector<2x4x8x32xf32>
    tpu.vector_store %arg5[%c0_42, %c0_43, %c0_44, %c0_45], %175 {strides = array<i32>} : memref<2x4x8x32xf32, #tpu.memory_space<vmem>>, vector<2x4x8x32xf32>,
    return
  }
  func.func @transform_0(%arg0: i32, %arg1: memref<16xi32, #tpu.memory_space<smem>>) -> (i32, i32) {
    %c0_i32 = arith.constant 0 : i32
    %c0_i32_0 = arith.constant 0 : i32
    %c0_i32_1 = arith.constant 0 : i32
    return %c0_i32, %c0_i32_0 : i32, i32
  }
  func.func @transform_1(%arg0: i32, %arg1: memref<16xi32, #tpu.memory_space<smem>>) -> (i32, i32) {
    %c0_i32 = arith.constant 0 : i32
    %c0_i32_0 = arith.constant 0 : i32
    %c0_i32_1 = arith.constant 0 : i32
    return %c0_i32, %c0_i32_0 : i32, i32
  }
  func.func @transform_2(%arg0: i32, %arg1: memref<16xi32, #tpu.memory_space<smem>>) -> (i32, i32) {
    %c0_i32 = arith.constant 0 : i32
    %c0_i32_0 = arith.constant 0 : i32
    %c0_i32_1 = arith.constant 0 : i32
    return %c0_i32, %c0_i32_0 : i32, i32
  }
  func.func @transform_3(%arg0: i32, %arg1: memref<16xi32, #tpu.memory_space<smem>>) -> (i32, i32, i32, i32) {
    %c0_i32 = arith.constant 0 : i32
    %c0_i32_0 = arith.constant 0 : i32
    %c0_i32_1 = arith.constant 0 : i32
    %c0_i32_2 = arith.constant 0 : i32
    %c0_i32_3 = arith.constant 0 : i32
    return %c0_i32, %c0_i32_0, %c0_i32_1, %c0_i32_2 : i32, i32, i32, i32
  }
}

</mosaic_0001>

<bundles_post_ra>
// kernel: tpu_custom_call.1
= control target key start
LH: loop header
LB: loop body
LE: loop exit
PB: predicated region body
PF: predicated region fallthrough
CT: control target
= control target key end

     0   :  { %s1538_s18 = smov [#allocation3]   ;;  %s2062_s0 = inlined_call_operand.vmem [shape: s32[16], index: 0, kind: input, shape index: {}]   ;;  %s2063_s1 = inlined_call_operand.vmem [shape: f32[50,32], index: 1, kind: input, shape index: {}]   ;;  %s2064_s2 = inlined_call_operand.vmem [shape: f32[32,256], index: 2, kind: input, shape index: {}]   ;;  %s2065_s3 = inlined_call_operand.vmem [shape: f32[1,256], index: 3, kind: input, shape index: {}]   ;;  %s2066_s4 = inlined_call_operand.hbm [shape: f32[2,4,8,32], index: 4, kind: output, shape index: {}]  }
   0x1   :  { %s10_s17 = sshll.u32 %s2062_s0, 4  ;;  %s11_s17 = int_to_ptr.vmem [resolvable:$true] %s10_s17 }
   0x2   :  { %13 = dma.vmem_to_smem %s11_s17, 16, %s1538_s18, [#allocation2] }
   0x3   :  { %1534 = dma.done.wait [#allocation2], 16 }
   0x4   :  { %1535 = vsyncadd [#allocation2], 4294967280 }
   0x5   :  { %16 = sfence }
   0x6   :  { %s24_s19 = sld [smem:[#allocation3]] }
   0x7   :  { %s1343_s20 = sld [smem:[#allocation3 + $0x1]] }
   0x8   :  { %s1344_s21 = sld [smem:[#allocation3 + $0x2]] }
   0x9   :  { %17 = vsyncpa [#allocation5], 0  ;;  %s1345_s22 = sld [smem:[#allocation3 + $0x3]]  ;;  %vm114_vm0 = vcmask 1040384   ;;  %vm116_vm1 = vcmask 1041408   ;;  %vm118_vm2 = vcmask 1042432  }
   0xa   :  { %s1346_s23 = sld [smem:[#allocation3 + $0x4]]  ;;  %vm120_vm3 = vcmask 1043456   ;;  %vm122_vm4 = vcmask 1044480   ;;  %vm124_vm5 = vcmask 1045504   ;;  %vm126_vm6 = vcmask 1046528   ;;  %v197_v56 = vld [vmem:[%s2064_s2 + $0x30] sm:$0xff] }
   0xb   :  { %s1347_s24 = sld [smem:[#allocation3 + $0x5]]  ;;  %vm135_vm7 = vcmask 261120   ;;  %v1539_v50 = vmov 32.0   ;;  %v198_v57 = vld [vmem:[%s2064_s2 + $0x38] sm:$0xff]  ;;  %223 = vmatpush.msra.mxu0 %v197_v56  ;;  %v195_v59 = vld [vmem:[%s2064_s2 + $0x20] sm:$0xff]  ;;  %v196_v60 = vld [vmem:[%s2064_s2 + $0x28] sm:$0xff] }
   0xc   :  { %s25_s27 = scalar_lea.vmem %s2063_s1, %s24_s19  ;;  %s1579_s28 = sld [smem:[#allocation3 + $0x6]]  ;;  %1412 = vrcp.f32 %v1539_v50  ;;  %246 = vmatpush.msra.mxu1 %v198_v57  ;;  %v193_v62 = vld [vmem:[%s2064_s2 + $0x10] sm:$0xff]  ;;  %v194_v63 = vld [vmem:[%s2064_s2 + $0x18] sm:$0xff]  ;;  %vm293_vm15 = vcmask 130048  }
   0xd   :  { %s28_s30 = scalar_lea.vmem %s2063_s1, %s1343_s20  ;;  %s1584_s5 = sld [smem:[#allocation3 + $0x7]]  ;;  %v26_v0 = vld [vmem:[%s25_s27] sm:$0x1]  ;;  %224 = vmatpush.msra.mxu0 %v195_v59 }
   0xe   :  { %v29_v1 = vld [vmem:[%s28_s30] sm:$0x1]  ;;  %s31_s8 = scalar_lea.vmem %s2063_s1, %s1344_s21  ;;  %s1589_s9 = sld [smem:[#allocation3 + $0x8]]  ;;  %247 = vmatpush.msra.mxu1 %v196_v60 }
   0xf   :  { %v32_v2 = vld [vmem:[%s31_s8] sm:$0x1]  ;;  %s34_s12 = scalar_lea.vmem %s2063_s1, %s1345_s22  ;;  %v73_v3 = vrot.slane %v29_v1, 7  ;;  %s1594_s13 = sld [smem:[#allocation3 + $0x9]]  ;;  %225 = vmatpush.msra.mxu0 %v193_v62  ;;  %v192_v1 = vld [vmem:[%s2064_s2 + $0x8] sm:$0xff] }
  0x10   :  { %v35_v4 = vld [vmem:[%s34_s12] sm:$0x1]  ;;  %s37_s16 = scalar_lea.vmem %s2063_s1, %s1346_s23  ;;  %v76_v5 = vrot.slane %v32_v2, 6  ;;  %s1599_s17 = sld [smem:[#allocation3 + $0xa]]  ;;  %248 = vmatpush.msra.mxu1 %v194_v63 }
  0x11   :  { %v38_v6 = vld [vmem:[%s37_s16] sm:$0x1]  ;;  %s40_s20 = scalar_lea.vmem %s2063_s1, %s1347_s24  ;;  %v79_v7 = vrot.slane %v35_v4, 5  ;;  %v115_v8 = vsel %vm114_vm0, %v26_v0, %v73_v3  ;;  %s1605_s21 = sld [smem:[#allocation3 + $0xb]] }
  0x12   :  { %v41_v9 = vld [vmem:[%s40_s20] sm:$0x1]  ;;  %s43_s23 = scalar_lea.vmem %s2063_s1, %s1579_s28  ;;  %v82_v10 = vrot.slane %v38_v6, 4  ;;  %v117_v11 = vsel %vm116_vm1, %v115_v8, %v76_v5  ;;  %s1612_s26 = sld [smem:[#allocation3 + $0xc]]  ;;  %v1413_v51 = vpop.eup %1412  ;;  %249 = vmatpush.msra.mxu1 %v192_v1 }
  0x13   :  { %v44_v12 = vld [vmem:[%s43_s23] sm:$0x1]  ;;  %s46_s0 = scalar_lea.vmem %s2063_s1, %s1584_s5  ;;  %v85_v13 = vrot.slane %v41_v9, 3  ;;  %v119_v14 = vsel %vm118_vm2, %v117_v11, %v79_v7  ;;  %s1619_s29 = sld [smem:[#allocation3 + $0xd]]  ;;  %v143_v52 = vmul.f32 32.0, %v1413_v51  ;;  %vm147_vm8 = vweird.f32 %v1413_v51 }
  0x14   :  { %v47_v15 = vld [vmem:[%s46_s0] sm:$0x1]  ;;  %v88_v16 = vrot.slane %v44_v12, 2  ;;  %v121_v17 = vsel %vm120_vm3, %v119_v14, %v82_v10  ;;  %s49_s6 = scalar_lea.vmem %s2063_s1, %s1589_s9  ;;  %s1356_s7 = sld [smem:[#allocation3 + $0xe]] }
  0x15   :  { %v91_v18 = vrot.slane %v47_v15, 1  ;;  %v123_v19 = vsel %vm122_vm4, %v121_v17, %v85_v13  ;;  %s52_s10 = scalar_lea.vmem %s2063_s1, %s1594_s13  ;;  %s1357_s11 = sld [smem:[#allocation3 + $0xf]]  ;;  %v50_v21 = vld [vmem:[%s49_s6] sm:$0x1]  ;;  %v144_v53 = vsub.f32 1.0, %v143_v52 }
  0x16   :  { %v125_v20 = vsel %vm124_vm5, %v123_v19, %v88_v16  ;;  %v53_v22 = vld [vmem:[%s52_s10] sm:$0x1]  ;;  %s55_s9 = scalar_lea.vmem %s2063_s1, %s1599_s17  ;;  %s1540_s19 = smov 80  }
  0x17   :  { %v1637_v23 = vsel %vm126_vm6, %v125_v20, %v91_v18  ;;  %v56_v24 = vld [vmem:[%s55_s9] sm:$0x1]  ;;  %s58_s18 = scalar_lea.vmem %s2063_s1, %s1605_s21  ;;  %v94_v25 = vrot.slane %v53_v22, 7  ;;  %v145_v54 = vmul.f32 %v1413_v51, %v144_v53  ;;  %s1542_s17 = smov 96  }
  0x18   :  { %v136_v26 = vsel %vm135_vm7, %v1637_v23, 0.0  ;;  %v59_v27 = vld [vmem:[%s58_s18] sm:$0x1]  ;;  %s61_s20 = scalar_lea.vmem %s2063_s1, %s1612_s26  ;;  %v97_v28 = vrot.slane %v56_v24, 6  ;;  %v151_v35 = vmul.f32 %v1637_v23, %v1637_v23  ;;  %s1543_s22 = smov 64  }
  0x19   :  { %137 = vadd.xlane.f32.xlu0 %v136_v26  ;;  %v62_v29 = vld [vmem:[%s61_s20] sm:$0x1]  ;;  %s64_s25 = scalar_lea.vmem %s2063_s1, %s1619_s29  ;;  %v100_v30 = vrot.slane %v59_v27, 5  ;;  %v128_v31 = vsel %vm114_vm0, %v50_v21, %v94_v25  ;;  %v146_v55 = vadd.f32 %v1413_v51, %v145_v54  ;;  %s1541_s20 = smov 112   ;;  %vm500_vm0 = vcmask 64512  }
  0x1a   :  { %v65_v32 = vld [vmem:[%s64_s25] sm:$0x1]  ;;  %s67_s24 = scalar_lea.vmem %s2063_s1, %s1356_s7  ;;  %v103_v33 = vrot.slane %v62_v29, 4  ;;  %v129_v34 = vsel %vm116_vm1, %v128_v31, %v97_v28  ;;  %v153_v45 = vsel %vm135_vm7, %v151_v35, 0.0  ;;  %s1545_s25 = smov [#allocation4]  }
  0x1b   :  { %v68_v36 = vld [vmem:[%s67_s24] sm:$0x1]  ;;  %s70_s0 = scalar_lea.vmem %s2063_s1, %s1357_s11  ;;  %v106_v37 = vrot.slane %v65_v32, 3  ;;  %v130_v38 = vsel %vm118_vm2, %v129_v34, %v100_v30  ;;  %v148_v61 = vsel %vm147_vm8, %v1413_v51, %v146_v55  ;;  %s1313_s21 = sshll.u32 %s1545_s25, 4  ;;  %s1314_s21 = int_to_ptr.vmem [resolvable:$true] %s1313_s21 }
  0x1c   :  { %v71_v39 = vld [vmem:[%s70_s0] sm:$0x1]  ;;  %v109_v40 = vrot.slane %v68_v36, 2  ;;  %v131_v41 = vsel %vm120_vm3, %v130_v38, %v103_v33  ;;  %s1315_s26 = sshll.u32 %s2066_s4, 4  ;;  %s1546_s27 = smov 128   ;;  %s1316_s26 = int_to_ptr.hbm [resolvable:$true] %s1315_s26 }
  0x1d   :  { %v112_v42 = vrot.slane %v71_v39, 1  ;;  %v132_v43 = vsel %vm122_vm4, %v131_v41, %v106_v37  ;;  %v191_v0 = vld [vmem:[%s2064_s2] sm:$0xff]  ;;  %s1547_s0 = smov 8  }
  0x1e   :  { %v133_v44 = vsel %vm124_vm5, %v132_v43, %v109_v40  ;;  %226 = vmatpush.msra.mxu0 %v191_v0 }
  0x1f   :  { %v1669_v46 = vsel %vm126_vm6, %v133_v44, %v112_v42 }
  0x20   :  { %v139_v47 = vsel %vm135_vm7, %v1669_v46, 0.0  ;;  %v152_v48 = vmul.f32 %v1669_v46, %v1669_v46 }
  0x21   :  { %140 = vadd.xlane.f32.xlu1 %v139_v47  ;;  %154 = vadd.xlane.f32.xlu0 %v153_v45 }
  0x22   :  { %v156_v49 = vsel %vm135_vm7, %v152_v48, 0.0 }
  0x29   :  { %157 = vadd.xlane.f32.xlu1 %v156_v49 }
  0x8c   :  { %v138_v58 = vpop.xlane.xlu0 %137 }
  0x8d   :  { %v149_v2 = vmul.f32 %v148_v61, %v138_v58 }
  0x8f   :  { %v161_v5 = vmul.f32 %v149_v2, %v149_v2  ;;  %v165_v24 = vsub.f32 %v1637_v23, %v149_v2  ;;  %v199_v23 = vld [vmem:[%s2065_s3] sm:$0x3]  ;;  %s1544_s3 = smov 32  }
  0x90   :  { %v201_v34 = vperm.slane %v199_v23, 0  ;;  %v202_v49 = vperm.slane %v199_v23, 1 }
  0x94   :  { %v141_v3 = vpop.xlane.xlu1 %140  ;;  %v155_v4 = vpop.xlane.xlu0 %154 }
  0x95   :  { %v159_v6 = vmul.f32 %v155_v4, %v148_v61  ;;  %v150_v7 = vmul.f32 %v148_v61, %v141_v3 }
  0x97   :  { %v163_v8 = vsub.f32 %v159_v6, %v161_v5  ;;  %v162_v10 = vmul.f32 %v150_v7, %v150_v7  ;;  %v166_v30 = vsub.f32 %v1669_v46, %v150_v7 }
  0x99   :  { %v167_v9 = vadd.f32 1e-05, %v163_v8 }
  0x9b   :  { %1414 = vrsqrt.f32 %v167_v9  ;;  %vm175_vm10 = vweird.f32 %v167_v9 }
  0x9c   :  { %v158_v11 = vpop.xlane.xlu1 %157 }
  0x9d   :  { %v160_v12 = vmul.f32 %v158_v11, %v148_v61 }
  0x9f   :  { %v164_v13 = vsub.f32 %v160_v12, %v162_v10 }
  0xa1   :  { %v1415_v14 = vpop.eup %1414  ;;  %v168_v15 = vadd.f32 1e-05, %v164_v13 }
  0xa2   :  { %v170_v16 = vmul.f32 %v1415_v14, %v167_v9  ;;  %vm176_vm9 = vweird.f32 %v1415_v14 }
  0xa3   :  { %1416 = vrsqrt.f32 %v168_v15  ;;  %vm177_vm11 = vmor %vm175_vm10, %vm176_vm9  ;;  %vm185_vm12 = vweird.f32 %v168_v15 }
  0xa4   :  { %v171_v17 = vmul.f32 %v1415_v14, %v170_v16 }
  0xa6   :  { %v172_v18 = vmul.f32 0.5, %v171_v17 }
  0xa8   :  { %v173_v19 = vsub.f32 1.5, %v172_v18 }
  0xa9   :  { %v1417_v20 = vpop.eup %1416 }
  0xaa   :  { %v180_v21 = vmul.f32 %v1417_v20, %v168_v15  ;;  %v174_v22 = vmul.f32 %v1415_v14, %v173_v19  ;;  %vm186_vm13 = vweird.f32 %v1417_v20 }
  0xab   :  { %vm187_vm14 = vmor %vm185_vm12, %vm186_vm13 }
  0xac   :  { %v181_v25 = vmul.f32 %v1417_v20, %v180_v21  ;;  %v178_v26 = vsel %vm177_vm11, %v1415_v14, %v174_v22 }
  0xad   :  { %v189_v27 = vmul.f32 %v178_v26, %v165_v24 }
  0xae   :  { %v182_v28 = vmul.f32 0.5, %v181_v25 }
  0xaf   :  { %1358 = vmatmul.msk.f32.vlgmr.msra.gmra.mxu0 %vm135_vm7, %v189_v27  ;;  %1360 = vmatmul.msk.f32.vlgmr.msra.gmra.mxu1 %vm135_vm7, %v189_v27 }
  0xb0   :  { %v183_v29 = vsub.f32 1.5, %v182_v28 }
  0xb2   :  { %v184_v31 = vmul.f32 %v1417_v20, %v183_v29 }
  0xb4   :  { %v188_v32 = vsel %vm187_vm14, %v1417_v20, %v184_v31 }
  0xb5   :  { %v190_v33 = vmul.f32 %v188_v32, %v166_v30 }
  0xb7   :  { %1359 = vmatmul.msk.f32.gmra.mxu0 %vm135_vm7, %v190_v33  ;;  %1361 = vmatmul.msk.f32.gmra.mxu1 %vm135_vm7, %v190_v33 }
 0x12c   :  { %v228_v35 = vpop.f32.mrf.mxu0  ;;  %v251_v47 = vpop.f32.mrf.mxu1 }
 0x12d   :  { %v229_v36 = vadd.f32 %v228_v35, %v201_v34  ;;  %v1725_v50 = vadd.f32 %v251_v47, %v202_v49 }
 0x12f   :  { %262 = vrot.lane.b32.xlu0 %v229_v36, %s1540_s19  ;;  %258 = vrot.lane.b32.xlu2 %v229_v36, %s1541_s20 }
 0x134   :  { %v231_v37 = vpop.f32.mrf.mxu0  ;;  %v254_v51 = vpop.f32.mrf.mxu1 }
 0x135   :  { %v232_v38 = vadd.f32 %v231_v37, %v201_v34  ;;  %v1729_v53 = vadd.f32 %v254_v51, %v202_v49 }
 0x137   :  { %265 = vrot.lane.b32.xlu1 %v232_v38, %s1541_s20  ;;  %260 = vrot.lane.b32.xlu2 %v229_v36, %s1542_s17 }
 0x13f   :  { %267 = vrot.lane.b32.xlu2 %v232_v38, %s1542_s17 }
 0x147   :  { %269 = vrot.lane.b32.xlu2 %v232_v38, %s1540_s19 }
 0x14f   :  { %291 = vrot.lane.b32.xlu2 %v229_v36, %s1543_s22 }
 0x189   :  { %v259_v39 = vpop.permute.xlu2 %258 }
 0x18a   :  { %318 = vrot.lane.b32.xlu0 %v259_v39, %s1543_s22 }
 0x191   :  { %v261_v40 = vpop.permute.xlu2 %260 }
 0x192   :  { %396 = vrot.lane.b32.xlu0 %v232_v38, %s1543_s22  ;;  %344 = vrot.lane.b32.xlu2 %v261_v40, %s1543_s22 }
 0x199   :  { %v268_v41 = vpop.permute.xlu2 %267 }
 0x1a1   :  { %v263_v42 = vpop.permute.xlu0 %262  ;;  %v270_v43 = vpop.permute.xlu2 %269 }
 0x1a2   :  { %370 = vrot.lane.b32.xlu1 %v263_v42, %s1543_s22  ;;  %474 = vrot.lane.b32.xlu0 %v270_v43, %s1543_s22 }
 0x1a9   :  { %v266_v44 = vpop.permute.xlu1 %265  ;;  %v292_v45 = vpop.permute.xlu2 %291 }
 0x1aa   :  { %422 = vrot.lane.b32.xlu2 %v266_v44, %s1543_s22  ;;  %448 = vrot.lane.b32.xlu1 %v268_v41, %s1543_s22 }
 0x1ab   :  { %1362 = vmatpush.xpose.msk.msra.mxu2 %vm293_vm15, %v292_v45 }
 0x1ae   :  { %1363 = vmatmul.msk.f32.vlgmr.msra.gmra.mxu2 %vm293_vm15, %v229_v36 }
 0x1ec   :  { %v345_v46 = vpop.permute.xlu2 %344 }
 0x1ed   :  { %1366 = vmatpush.xpose.msk.msrb.mxu2 %vm293_vm15, %v345_v46 }
 0x1f0   :  { %1367 = vmatmul.msk.f32.vlgmr.msrb.gmra.mxu2 %vm293_vm15, %v261_v40 }
 0x1fc   :  { %v319_v48 = vpop.permute.xlu0 %318 }
 0x1fd   :  { %1364 = vmatpush.xpose.msk.msra.mxu3 %vm293_vm15, %v319_v48 }
 0x200   :  { %1365 = vmatmul.msk.f32.vlgmr.msra.gmra.mxu3 %vm293_vm15, %v259_v39 }
 0x204   :  { %v397_v52 = vpop.permute.xlu0 %396  ;;  %v423_v56 = vpop.permute.xlu2 %422 }
 0x205   :  { %1370 = vmatpush.xpose.msk.msra.mxu2 %vm293_vm15, %v397_v52 }
 0x208   :  { %1371 = vmatmul.msk.f32.vlgmr.msra.gmra.mxu2 %vm293_vm15, %v232_v38 }
 0x209   :  { %1135 = vmatpush.msrb.mxu2 %v1725_v50 }
 0x20b   :  { %1227 = vmatpush.msra.mxu2 %v1729_v53 }
 0x214   :  { %v371_v54 = vpop.permute.xlu1 %370  ;;  %v475_v55 = vpop.permute.xlu0 %474 }
 0x215   :  { %1368 = vmatpush.xpose.msk.msrb.mxu3 %vm293_vm15, %v371_v54  ;;  %1376 = vmatpush.xpose.msk.msrb.mxu1 %vm293_vm15, %v475_v55 }
 0x218   :  { %1369 = vmatmul.msk.f32.vlgmr.msrb.gmra.mxu3 %vm293_vm15, %v263_v42  ;;  %1377 = vmatmul.msk.f32.vlgmr.msrb.gmra.mxu1 %vm293_vm15, %v270_v43 }
 0x219   :  { %1372 = vmatpush.xpose.msk.msra.mxu3 %vm293_vm15, %v423_v56 }
 0x21c   :  { %v449_v57 = vpop.permute.xlu1 %448 }
 0x21d   :  { %1374 = vmatpush.xpose.msk.msrb.mxu0 %vm293_vm15, %v449_v57 }
 0x220   :  { %1373 = vmatmul.msk.f32.vlgmr.msra.gmra.mxu3 %vm293_vm15, %v266_v44  ;;  %1375 = vmatmul.msk.f32.vlgmr.msrb.gmra.mxu0 %vm293_vm15, %v268_v41 }
 0x231   :  { %v315_v58 = vpop.f32.mrf.mxu2 }
 0x232   :  { %v525_v59 = vsel %vm500_vm0, %v315_v58, inf  ;;  %v501_v60 = vsel %vm500_vm0, %v315_v58, -inf }
 0x233   :  { %526 = vmin.xlane.f32.xlu0 %v525_v59  ;;  %502 = vmax.xlane.f32.xlu2 %v501_v60 }
 0x273   :  { %v1749_v0 = vpop.f32.mrf.mxu2 }
 0x274   :  { %v531_v1 = vsel %vm500_vm0, %v1749_v0, inf  ;;  %v507_v2 = vsel %vm500_vm0, %v1749_v0, -inf }
 0x283   :  { %v1743_v61 = vpop.f32.mrf.mxu3 }
 0x284   :  { %v504_v62 = vsel %vm500_vm0, %v1743_v61, -inf  ;;  %v528_v63 = vsel %vm500_vm0, %v1743_v61, inf }
 0x285   :  { %505 = vmax.xlane.f32.xlu1 %v504_v62  ;;  %529 = vmin.xlane.f32.xlu2 %v528_v63 }
 0x28b   :  { %v1765_v8 = vpop.f32.mrf.mxu2 }
 0x28c   :  { %v537_v10 = vsel %vm500_vm0, %v1765_v8, inf  ;;  %v513_v11 = vsel %vm500_vm0, %v1765_v8, -inf }
 0x28d   :  { %532 = vmin.xlane.f32.xlu2 %v531_v1  ;;  %508 = vmax.xlane.f32.xlu1 %v507_v2 }
 0x295   :  { %v1775_v16 = vpop.f32.mrf.mxu1 }
 0x296   :  { %v522_v18 = vsel %vm500_vm0, %v1775_v16, -inf  ;;  %v546_v20 = vsel %vm500_vm0, %v1775_v16, inf }
 0x29b   :  { %v1755_v3 = vpop.f32.mrf.mxu3 }
 0x29c   :  { %v510_v4 = vsel %vm500_vm0, %v1755_v3, -inf  ;;  %v534_v5 = vsel %vm500_vm0, %v1755_v3, inf }
 0x29d   :  { %v1761_v6 = vpop.f32.mrf.mxu0  ;;  %511 = vmax.xlane.f32.xlu0 %v510_v4  ;;  %535 = vmin.xlane.f32.xlu1 %v534_v5 }
 0x29e   :  { %v519_v7 = vsel %vm500_vm0, %v1761_v6, -inf  ;;  %v543_v19 = vsel %vm500_vm0, %v1761_v6, inf }
 0x29f   :  { %520 = vmax.xlane.f32.xlu2 %v519_v7 }
 0x2a3   :  { %v1767_v9 = vpop.f32.mrf.mxu3 }
 0x2a4   :  { %v516_v14 = vsel %vm500_vm0, %v1767_v9, -inf  ;;  %v540_v25 = vsel %vm500_vm0, %v1767_v9, inf }
 0x2a5   :  { %538 = vmin.xlane.f32.xlu1 %v537_v10  ;;  %514 = vmax.xlane.f32.xlu0 %v513_v11 }
 0x2a6   :  { %v527_v12 = vpop.xlane.xlu0 %526  ;;  %v503_v13 = vpop.xlane.xlu2 %502 }
 0x2a7   :  { %v549_v15 = vsub.f32 %v503_v13, %v527_v12  ;;  %517 = vmax.xlane.f32.xlu2 %v516_v14  ;;  %v685_v31 = vsub.f32 %v315_v58, %v527_v12 }
 0x2a9   :  { %v557_v17 = vmax.f32 %v549_v15, 1e-20 }
 0x2ab   :  { %1418 = vrcp.f32 %v557_v17  ;;  %v576_v26 = vand.u32 2147483648, %v557_v17  ;;  %v574_v28 = vand.u32 2147483647, %v557_v17  ;;  %vm570_vm2 = vweird.f32 %v557_v17 }
 0x2ad   :  { %523 = vmax.xlane.f32.xlu1 %v522_v18  ;;  %544 = vmin.xlane.f32.xlu0 %v543_v19  ;;  %v577_v30 = vor.u32 1.1754944e-38, %v576_v26  ;;  %vm575_vm4 = vcmp.eq.f32.partialorder %v574_v28, 8.507059e+37 }
 0x2af   :  { %547 = vmin.xlane.f32.xlu2 %v546_v20 }
 0x2b1   :  { %v1419_v21 = vpop.eup %1418 }
 0x2b2   :  { %v566_v22 = vmul.f32 %v1419_v21, %v557_v17  ;;  %vm571_vm1 = vweird.f32 %v1419_v21 }
 0x2b3   :  { %vm572_vm3 = vmor %vm570_vm2, %vm571_vm1 }
 0x2b4   :  { %v567_v24 = vsub.f32 1.0, %v566_v22 }
 0x2b5   :  { %541 = vmin.xlane.f32.xlu0 %v540_v25 }
 0x2b6   :  { %v568_v27 = vmul.f32 %v1419_v21, %v567_v24 }
 0x2b8   :  { %v569_v29 = vadd.f32 %v1419_v21, %v568_v27 }
 0x2ba   :  { %v573_v32 = vsel %vm572_vm3, %v1419_v21, %v569_v29 }
 0x2bb   :  { %v578_v33 = vsel %vm575_vm4, %v577_v30, %v573_v32 }
 0x2bc   :  { %v1785_v23 = vmul.f32 %v685_v31, %v578_v33 }
 0x2be   :  { %v869_v34 = vsel %vm500_vm0, %v1785_v23, -inf }
 0x2bf   :  { %870 = vmax.xlane.f32.xlu1 %v869_v34 }
 0x2f8   :  { %v506_v35 = vpop.xlane.xlu1 %505  ;;  %v530_v36 = vpop.xlane.xlu2 %529 }
 0x2f9   :  { %v550_v37 = vsub.f32 %v506_v35, %v530_v36  ;;  %v686_v55 = vsub.f32 %v1743_v61, %v530_v36 }
 0x2fb   :  { %v558_v38 = vmax.f32 %v550_v37, 1e-20 }
 0x2fd   :  { %1420 = vrcp.f32 %v558_v38  ;;  %v591_v46 = vand.u32 2147483648, %v558_v38  ;;  %v589_v48 = vand.u32 2147483647, %v558_v38  ;;  %vm585_vm6 = vweird.f32 %v558_v38 }
 0x2ff   :  { %v592_v52 = vor.u32 1.1754944e-38, %v591_v46  ;;  %vm590_vm9 = vcmp.eq.f32.partialorder %v589_v48, 8.507059e+37 }
 0x300   :  { %v509_v39 = vpop.xlane.xlu1 %508  ;;  %v533_v40 = vpop.xlane.xlu2 %532 }
 0x301   :  { %v551_v41 = vsub.f32 %v509_v39, %v533_v40  ;;  %v687_v13 = vsub.f32 %v1749_v0, %v533_v40 }
 0x303   :  { %v1421_v42 = vpop.eup %1420  ;;  %v559_v43 = vmax.f32 %v551_v41, 1e-20 }
 0x304   :  { %v581_v44 = vmul.f32 %v1421_v42, %v558_v38  ;;  %vm586_vm5 = vweird.f32 %v1421_v42 }
 0x305   :  { %1422 = vrcp.f32 %v559_v43  ;;  %vm587_vm8 = vmor %vm585_vm6, %vm586_vm5  ;;  %v606_v60 = vand.u32 2147483648, %v559_v43  ;;  %v604_v63 = vand.u32 2147483647, %v559_v43  ;;  %vm600_vm11 = vweird.f32 %v559_v43 }
 0x306   :  { %v582_v45 = vsub.f32 1.0, %v581_v44 }
 0x307   :  { %v607_v61 = vor.u32 1.1754944e-38, %v606_v60  ;;  %vm605_vm13 = vcmp.eq.f32.partialorder %v604_v63, 8.507059e+37 }
 0x308   :  { %v583_v47 = vmul.f32 %v1421_v42, %v582_v45 }
 0x30a   :  { %v584_v49 = vadd.f32 %v1421_v42, %v583_v47 }
 0x30b   :  { %v1423_v51 = vpop.eup %1422 }
 0x30c   :  { %v588_v54 = vsel %vm587_vm8, %v1421_v42, %v584_v49  ;;  %v596_v56 = vmul.f32 %v1423_v51, %v559_v43  ;;  %vm601_vm10 = vweird.f32 %v1423_v51 }
 0x30d   :  { %v593_v57 = vsel %vm590_vm9, %v592_v52, %v588_v54  ;;  %vm602_vm12 = vmor %vm600_vm11, %vm601_vm10 }
 0x30e   :  { %v1790_v58 = vmul.f32 %v686_v55, %v593_v57  ;;  %v597_v59 = vsub.f32 1.0, %v596_v56 }
 0x310   :  { %v598_v62 = vmul.f32 %v1423_v51, %v597_v59  ;;  %v512_v1 = vpop.xlane.xlu0 %511  ;;  %v536_v2 = vpop.xlane.xlu1 %535  ;;  %v872_v4 = vsel %vm500_vm0, %v1790_v58, -inf }
 0x311   :  { %v552_v5 = vsub.f32 %v512_v1, %v536_v2  ;;  %873 = vmax.xlane.f32.xlu0 %v872_v4  ;;  %v688_v39 = vsub.f32 %v1755_v3, %v536_v2 }
 0x312   :  { %v599_v7 = vadd.f32 %v1423_v51, %v598_v62  ;;  %v521_v10 = vpop.xlane.xlu2 %520 }
 0x313   :  { %v560_v11 = vmax.f32 %v552_v5, 1e-20 }
 0x314   :  { %v603_v12 = vsel %vm602_vm12, %v1423_v51, %v599_v7 }
 0x315   :  { %v608_v14 = vsel %vm605_vm13, %v607_v61, %v603_v12  ;;  %1424 = vrcp.f32 %v560_v11  ;;  %v621_v0 = vand.u32 2147483648, %v560_v11  ;;  %v619_v28 = vand.u32 2147483647, %v560_v11 }
 0x316   :  { %v1795_v15 = vmul.f32 %v687_v13, %v608_v14  ;;  %vm615_vm15 = vweird.f32 %v560_v11 }
 0x317   :  { %v622_v35 = vor.u32 1.1754944e-38, %v621_v0  ;;  %vm620_vm2 = vcmp.eq.f32.partialorder %v619_v28, 8.507059e+37 }
 0x318   :  { %v1797_v17 = vpop.xlane.xlu1 %538  ;;  %v515_v18 = vpop.xlane.xlu0 %514  ;;  %v875_v19 = vsel %vm500_vm0, %v1795_v15, -inf }
 0x319   :  { %v553_v20 = vsub.f32 %v515_v18, %v1797_v17  ;;  %876 = vmax.xlane.f32.xlu2 %v875_v19  ;;  %v689_v56 = vsub.f32 %v1765_v8, %v1797_v17 }
 0x31a   :  { %v518_v21 = vpop.xlane.xlu2 %517 }
 0x31b   :  { %v1425_v22 = vpop.eup %1424  ;;  %v561_v24 = vmax.f32 %v553_v20, 1e-20 }
 0x31c   :  { %v611_v25 = vmul.f32 %v1425_v22, %v560_v11  ;;  %vm616_vm14 = vweird.f32 %v1425_v22 }
 0x31d   :  { %1426 = vrcp.f32 %v561_v24  ;;  %vm617_vm1 = vmor %vm615_vm15, %vm616_vm14  ;;  %v636_v49 = vand.u32 2147483648, %v561_v24  ;;  %v634_v54 = vand.u32 2147483647, %v561_v24  ;;  %vm630_vm4 = vweird.f32 %v561_v24 }
 0x31e   :  { %v612_v26 = vsub.f32 1.0, %v611_v25 }
 0x31f   :  { %v637_v59 = vor.u32 1.1754944e-38, %v636_v49  ;;  %vm635_vm8 = vcmp.eq.f32.partialorder %v634_v54, 8.507059e+37 }
 0x320   :  { %v613_v27 = vmul.f32 %v1425_v22, %v612_v26  ;;  %v1802_v29 = vpop.xlane.xlu0 %544  ;;  %v524_v32 = vpop.xlane.xlu1 %523 }
 0x321   :  { %v555_v30 = vsub.f32 %v521_v10, %v1802_v29  ;;  %v691_v5 = vsub.f32 %v1761_v6, %v1802_v29 }
 0x322   :  { %v614_v31 = vadd.f32 %v1425_v22, %v613_v27  ;;  %v1805_v33 = vpop.xlane.xlu2 %547 }
 0x323   :  { %v1427_v34 = vpop.eup %1426  ;;  %v563_v36 = vmax.f32 %v555_v30, 1e-20  ;;  %v556_v37 = vsub.f32 %v524_v32, %v1805_v33  ;;  %v692_v0 = vsub.f32 %v1775_v16, %v1805_v33 }
 0x324   :  { %v618_v38 = vsel %vm617_vm1, %v1425_v22, %v614_v31  ;;  %v626_v40 = vmul.f32 %v1427_v34, %v561_v24  ;;  %vm631_vm3 = vweird.f32 %v1427_v34 }
 0x325   :  { %v623_v41 = vsel %vm620_vm2, %v622_v35, %v618_v38  ;;  %1428 = vrcp.f32 %v563_v36  ;;  %v564_v44 = vmax.f32 %v556_v37, 1e-20  ;;  %vm632_vm5 = vmor %vm630_vm4, %vm631_vm3  ;;  %v664_v62 = vand.u32 2147483647, %v563_v36 }
 0x326   :  { %v1809_v42 = vmul.f32 %v688_v39, %v623_v41  ;;  %v627_v43 = vsub.f32 1.0, %v626_v40  ;;  %v666_v63 = vand.u32 2147483648, %v563_v36  ;;  %vm660_vm9 = vweird.f32 %v563_v36 }
 0x327   :  { %1430 = vrcp.f32 %v564_v44  ;;  %vm665_vm11 = vcmp.eq.f32.partialorder %v664_v62, 8.507059e+37  ;;  %v681_v13 = vand.u32 2147483648, %v564_v44  ;;  %v679_v19 = vand.u32 2147483647, %v564_v44 }
 0x328   :  { %v1811_v45 = vpop.xlane.xlu0 %541  ;;  %v878_v46 = vsel %vm500_vm0, %v1809_v42, -inf  ;;  %v628_v48 = vmul.f32 %v1427_v34, %v627_v43  ;;  %v667_v12 = vor.u32 1.1754944e-38, %v666_v63  ;;  %vm675_vm13 = vweird.f32 %v564_v44 }
 0x329   :  { %879 = vmax.xlane.f32.xlu1 %v878_v46  ;;  %v554_v47 = vsub.f32 %v518_v21, %v1811_v45  ;;  %v682_v26 = vor.u32 1.1754944e-38, %v681_v13  ;;  %vm680_vm15 = vcmp.eq.f32.partialorder %v679_v19, 8.507059e+37  ;;  %v690_v41 = vsub.f32 %v1767_v9, %v1811_v45 }
 0x32a   :  { %v629_v55 = vadd.f32 %v1427_v34, %v628_v48 }
 0x32b   :  { %v1429_v51 = vpop.eup %1428  ;;  %v1816_v52 = vmax.f32 %v554_v47, 1e-20 }
 0x32c   :  { %v656_v3 = vmul.f32 %v1429_v51, %v563_v36  ;;  %v633_v1 = vsel %vm632_vm5, %v1427_v34, %v629_v55  ;;  %vm661_vm6 = vweird.f32 %v1429_v51 }
 0x32d   :  { %v1431_v60 = vpop.eup %1430  ;;  %1432 = vrcp.f32 %v1816_v52  ;;  %v638_v7 = vsel %vm635_vm8, %v637_v59, %v633_v1  ;;  %vm662_vm10 = vmor %vm660_vm9, %vm661_vm6  ;;  %v651_v34 = vand.u32 2147483648, %v1816_v52  ;;  %v649_v35 = vand.u32 2147483647, %v1816_v52 }
 0x32e   :  { %v657_v57 = vsub.f32 1.0, %v656_v3  ;;  %v671_v4 = vmul.f32 %v1431_v60, %v564_v44  ;;  %v1825_v11 = vmul.f32 %v689_v56, %v638_v7  ;;  %vm676_vm12 = vweird.f32 %v1431_v60 }
 0x32f   :  { %vm677_vm14 = vmor %vm675_vm13, %vm676_vm12  ;;  %vm645_vm2 = vweird.f32 %v1816_v52  ;;  %v652_v38 = vor.u32 1.1754944e-38, %v651_v34  ;;  %vm650_vm4 = vcmp.eq.f32.partialorder %v649_v35, 8.507059e+37 }
 0x330   :  { %v658_v2 = vmul.f32 %v1429_v51, %v657_v57  ;;  %v672_v8 = vsub.f32 1.0, %v671_v4  ;;  %v881_v46 = vsel %vm500_vm0, %v1825_v11, -inf }
 0x332   :  { %v659_v10 = vadd.f32 %v1429_v51, %v658_v2  ;;  %v1823_v61 = vpop.xlane.xlu1 %870  ;;  %v673_v18 = vmul.f32 %v1431_v60, %v672_v8 }
 0x333   :  { %v893_v14 = vsub.f32 %v1785_v23, %v1823_v61  ;;  %v1433_v6 = vpop.eup %1432 }
 0x334   :  { %v663_v17 = vsel %vm662_vm10, %v1429_v51, %v659_v10  ;;  %v674_v24 = vadd.f32 %v1431_v60, %v673_v18  ;;  %v641_v25 = vmul.f32 %v1433_v6, %v1816_v52  ;;  %vm646_vm1 = vweird.f32 %v1433_v6 }
 0x335   :  { %v668_v20 = vsel %vm665_vm11, %v667_v12, %v663_v17  ;;  %v901_v21 = vmul.f32 1.442695, %v893_v14  ;;  %vm647_vm3 = vmor %vm645_vm2, %vm646_vm1  ;;  %v701_v52 = vmul.f32 10.0, %v1785_v23  ;;  %v1061_v18 = vsub.f32 1.0, %v1823_v61 }
 0x336   :  { %v1829_v22 = vmul.f32 %v691_v5, %v668_v20  ;;  %v678_v27 = vsel %vm677_vm14, %v1431_v60, %v674_v24  ;;  %v642_v28 = vsub.f32 1.0, %v641_v25 }
 0x337   :  { %1434 = vpow2.f32 %v901_v21  ;;  %v683_v29 = vsel %vm680_vm15, %v682_v26, %v678_v27  ;;  %v1378_v55 = vadd.f32 -5.0, %v701_v52  ;;  %v1069_v25 = vmax.f32 %v1061_v18, 0.0 }
 0x338   :  { %v887_v30 = vsel %vm500_vm0, %v1829_v22, -inf  ;;  %v1836_v31 = vmul.f32 %v692_v0, %v683_v29  ;;  %v643_v32 = vmul.f32 %v1433_v6, %v642_v28 }
 0x339   :  { %888 = vmax.xlane.f32.xlu1 %v887_v30  ;;  %v1386_v57 = vmul.f32 -1.442695, %v1378_v55 }
 0x33a   :  { %v644_v36 = vadd.f32 %v1433_v6, %v643_v32  ;;  %v890_v16 = vsel %vm500_vm0, %v1836_v31, -inf  ;;  %v1077_v32 = vmin.f32 %v1069_v25, 1.0 }
 0x33b   :  { %891 = vmax.xlane.f32.xlu0 %v890_v16 }
 0x33c   :  { %v648_v37 = vsel %vm647_vm3, %v1433_v6, %v644_v36 }
 0x33d   :  { %v1843_v33 = vpop.eup %1434  ;;  %v653_v40 = vsel %vm650_vm4, %v652_v38, %v648_v37 }
 0x33e   :  { %v917_v39 = vsel %vm500_vm0, %v1843_v33, 0.0  ;;  %v1849_v43 = vmul.f32 %v690_v41, %v653_v40 }
 0x33f   :  { %918 = vadd.xlane.f32.xlu2 %v917_v39 }
 0x340   :  { %v884_v44 = vsel %vm500_vm0, %v1849_v43, -inf }
 0x347   :  { %885 = vmax.xlane.f32.xlu2 %v884_v44  ;;  %v1093_v44 = vsub.f32 1.0, %v1077_v32 }
 0x34f   :  { %272 = vrot.lane.b32.xlu0 %v1725_v50, %s1542_s17 }
 0x35f   :  { %275 = vrot.lane.b32.xlu2 %v1725_v50, %s1543_s22 }
 0x379   :  { %882 = vmax.xlane.f32.xlu0 %v881_v46 }
 0x384   :  { %v1859_v47 = vpop.xlane.xlu0 %873 }
 0x385   :  { %v894_v9 = vsub.f32 %v1790_v58, %v1859_v47 }
 0x387   :  { %v903_v45 = vmul.f32 1.442695, %v894_v9 }
 0x389   :  { %1436 = vpow2.f32 %v903_v45 }
 0x38c   :  { %v1863_v48 = vpop.xlane.xlu2 %876 }
 0x38d   :  { %v895_v49 = vsub.f32 %v1795_v15, %v1863_v48 }
 0x38f   :  { %v1867_v51 = vpop.eup %1436  ;;  %v905_v3 = vmul.f32 1.442695, %v895_v49 }
 0x390   :  { %v920_v54 = vsel %vm500_vm0, %v1867_v51, 0.0 }
 0x391   :  { %1438 = vpow2.f32 %v905_v3  ;;  %921 = vadd.xlane.f32.xlu1 %v920_v54 }
 0x392   :  { %1440 = vpow2.f32 %v1386_v57 }
 0x397   :  { %v1872_v56 = vpop.eup %1438 }
 0x398   :  { %v923_v59 = vsel %vm500_vm0, %v1872_v56, 0.0  ;;  %v1441_v60 = vpop.eup %1440 }
 0x399   :  { %924 = vadd.xlane.f32.xlu0 %v923_v59  ;;  %v741_v62 = vadd.f32 1.0, %v1441_v60 }
 0x39b   :  { %1442 = vrcp.f32 %v741_v62  ;;  %vm754_vm8 = vweird.f32 %v741_v62  ;;  %v760_v36 = vand.u32 2147483648, %v741_v62  ;;  %v758_v37 = vand.u32 2147483647, %v741_v62 }
 0x39c   :  { %v1876_v63 = vpop.xlane.xlu1 %879 }
 0x39d   :  { %v896_v4 = vsub.f32 %v1809_v42, %v1876_v63  ;;  %v761_v49 = vor.u32 1.1754944e-38, %v760_v36  ;;  %vm759_vm13 = vcmp.eq.f32.partialorder %v758_v37, 8.507059e+37 }
 0x39f   :  { %v907_v14 = vmul.f32 1.442695, %v896_v4 }
 0x3a1   :  { %v1443_v2 = vpop.eup %1442 }
 0x3a2   :  { %v750_v8 = vmul.f32 %v1443_v2, %v741_v62  ;;  %vm755_vm5 = vweird.f32 %v1443_v2 }
 0x3a3   :  { %vm1903_vm9 = vmor %vm754_vm8, %vm755_vm5 }
 0x3a4   :  { %v751_v17 = vsub.f32 1.0, %v750_v8 }
 0x3a6   :  { %v752_v21 = vmul.f32 %v1443_v2, %v751_v17 }
 0x3a8   :  { %v753_v29 = vadd.f32 %v1443_v2, %v752_v21 }
 0x3aa   :  { %v757_v41 = vsel %vm1903_vm9, %v1443_v2, %v753_v29 }
 0x3ab   :  { %v762_v55 = vsel %vm759_vm13, %v761_v49, %v757_v41 }
 0x3ac   :  { %v1878_v23 = vpop.xlane.xlu1 %888  ;;  %v1101_v57 = vmul.f32 %v1093_v44, %v762_v55 }
 0x3ad   :  { %282 = vrot.lane.b32.xlu0 %v1729_v53, %s1542_s17  ;;  %v899_v1 = vsub.f32 %v1829_v22, %v1878_v23 }
 0x3ae   :  { %v1886_v7 = vpop.xlane.xlu0 %891 }
 0x3af   :  { %v913_v5 = vmul.f32 1.442695, %v899_v1  ;;  %v900_v10 = vsub.f32 %v1836_v31, %v1886_v7 }
 0x3b1   :  { %1444 = vpow2.f32 %v913_v5  ;;  %v915_v12 = vmul.f32 1.442695, %v900_v10  ;;  %v703_v10 = vmul.f32 10.0, %v1795_v15 }
 0x3b2   :  { %v919_v13 = vpop.xlane.xlu2 %918 }
 0x3b3   :  { %1446 = vrcp.f32 %v919_v13  ;;  %v952_v30 = vand.u32 2147483648, %v919_v13  ;;  %v950_v35 = vand.u32 2147483647, %v919_v13  ;;  %vm946_vm10 = vweird.f32 %v919_v13 }
 0x3b4   :  { %1448 = vpow2.f32 %v915_v12  ;;  %v1380_v8 = vadd.f32 -5.0, %v703_v10 }
 0x3b5   :  { %1450 = vpow2.f32 %v907_v14  ;;  %v953_v40 = vor.u32 1.1754944e-38, %v952_v30  ;;  %vm951_vm12 = vcmp.eq.f32.partialorder %v950_v35, 8.507059e+37  ;;  %v707_v30 = vmul.f32 10.0, %v1829_v22 }
 0x3b6   :  { %v1388_v14 = vmul.f32 -1.442695, %v1380_v8  ;;  %v1063_v22 = vsub.f32 1.0, %v1863_v48 }
 0x3b7   :  { %v1891_v19 = vpop.eup %1444 }
 0x3b8   :  { %v935_v6 = vsel %vm500_vm0, %v1891_v19, 0.0 }
 0x3b9   :  { %v1447_v20 = vpop.eup %1446  ;;  %936 = vadd.xlane.f32.xlu2 %v935_v6 }
 0x3ba   :  { %v1895_v24 = vpop.eup %1448  ;;  %v942_v26 = vmul.f32 %v1447_v20, %v919_v13  ;;  %v1897_v0 = vpop.xlane.xlu2 %885  ;;  %vm947_vm6 = vweird.f32 %v1447_v20 }
 0x3bb   :  { %v938_v27 = vsel %vm500_vm0, %v1895_v24, 0.0  ;;  %v1901_v61 = vpop.eup %1450  ;;  %vm948_vm11 = vmor %vm946_vm10, %vm947_vm6  ;;  %v898_v54 = vsub.f32 %v1849_v43, %v1897_v0 }
 0x3bc   :  { %v943_v28 = vsub.f32 1.0, %v942_v26  ;;  %939 = vadd.xlane.f32.xlu1 %v938_v27  ;;  %v926_v39 = vsel %vm500_vm0, %v1901_v61, 0.0 }
 0x3bd   :  { %v911_v60 = vmul.f32 1.442695, %v898_v54 }
 0x3be   :  { %v944_v34 = vmul.f32 %v1447_v20, %v943_v28  ;;  %v1062_v28 = vsub.f32 1.0, %v1859_v47 }
 0x3bf   :  { %1452 = vpow2.f32 %v911_v60 }
 0x3c0   :  { %v945_v38 = vadd.f32 %v1447_v20, %v944_v34  ;;  %v1070_v35 = vmax.f32 %v1062_v28, 0.0 }
 0x3c1   :  { %927 = vadd.xlane.f32.xlu2 %v926_v39  ;;  %v273_v9 = vpop.permute.xlu0 %272  ;;  %v1384_v39 = vadd.f32 -5.0, %v707_v30 }
 0x3c2   :  { %v949_v46 = vsel %vm948_vm11, %v1447_v20, %v945_v38  ;;  %v276_v45 = vpop.permute.xlu2 %275  ;;  %1158 = vmatpush.msrb.mxu3 %v273_v9  ;;  %v1078_v41 = vmin.f32 %v1070_v35, 1.0 }
 0x3c3   :  { %v954_v3 = vsel %vm951_vm12, %v953_v40, %v949_v46  ;;  %1181 = vmatpush.msra.mxu0 %v276_v45  ;;  %v1392_v55 = vmul.f32 -1.442695, %v1384_v39 }
 0x3c4   :  { %v955_v52 = vmul.f32 %v1843_v33, %v954_v3  ;;  %v702_v33 = vmul.f32 10.0, %v1790_v58  ;;  %v704_v3 = vmul.f32 10.0, %v1809_v42  ;;  %v1094_v60 = vsub.f32 1.0, %v1078_v41 }
 0x3c5   :  { %v1915_v1 = vpop.eup %1452 }
 0x3c6   :  { %v1085_v59 = vmul.f32 %v1077_v32, %v955_v52  ;;  %v932_v2 = vsel %vm500_vm0, %v1915_v1, 0.0  ;;  %v1379_v4 = vadd.f32 -5.0, %v702_v33 }
 0x3c8   :  { %v1109_v62 = vadd.f32 %v1101_v57, %v1085_v59  ;;  %v1387_v5 = vmul.f32 -1.442695, %v1379_v4 }
 0x3ca   :  { %1394 = vmatmul.msk.f32.vlgmr.msrb.gmra.mxu2 %vm500_vm0, %v1109_v62  ;;  %1454 = vpow2.f32 %v1387_v5  ;;  %v1381_v5 = vadd.f32 -5.0, %v704_v3 }
 0x3cc   :  { %v1389_v30 = vmul.f32 -1.442695, %v1381_v5 }
 0x3d0   :  { %v1455_v18 = vpop.eup %1454 }
 0x3d1   :  { %v742_v58 = vadd.f32 1.0, %v1455_v18 }
 0x3d3   :  { %vm769_vm14 = vweird.f32 %v742_v58  ;;  %v775_v38 = vand.u32 2147483648, %v742_v58  ;;  %v773_v9 = vand.u32 2147483647, %v742_v58 }
 0x3d5   :  { %v776_v54 = vor.u32 1.1754944e-38, %v775_v38  ;;  %vm774_vm5 = vcmp.eq.f32.partialorder %v773_v9, 8.507059e+37 }
 0x3d7   :  { %933 = vadd.xlane.f32.xlu0 %v932_v2  ;;  %v1071_v2 = vmax.f32 %v1063_v22, 0.0 }
 0x3d9   :  { %285 = vrot.lane.b32.xlu2 %v1729_v53, %s1543_s22 }
 0x3eb   :  { %288 = vrot.lane.b32.xlu0 %v1729_v53, %s1544_s3 }
 0x3ec   :  { %v1925_v12 = vpop.xlane.xlu0 %882 }
 0x3ed   :  { %v897_v13 = vsub.f32 %v1825_v11, %v1925_v12 }
 0x3ef   :  { %v909_v17 = vmul.f32 1.442695, %v897_v13 }
 0x3f1   :  { %1456 = vpow2.f32 %v909_v17 }
 0x3f2   :  { %1458 = vpow2.f32 %v1388_v14 }
 0x3f3   :  { %1460 = vrcp.f32 %v742_v58 }
 0x3f7   :  { %v1929_v6 = vpop.eup %1456 }
 0x3f8   :  { %v929_v15 = vsel %vm500_vm0, %v1929_v6, 0.0  ;;  %v1459_v53 = vpop.eup %1458 }
 0x3f9   :  { %930 = vadd.xlane.f32.xlu1 %v929_v15  ;;  %v1933_v20 = vadd.f32 1.0, %v1459_v53  ;;  %v1461_v21 = vpop.eup %1460 }
 0x3fa   :  { %v765_v25 = vmul.f32 %v1461_v21, %v742_v58  ;;  %vm770_vm15 = vweird.f32 %v1461_v21  ;;  %v1079_v58 = vmin.f32 %v1071_v2, 1.0 }
 0x3fb   :  { %1462 = vrcp.f32 %v1933_v20  ;;  %vm1948_vm2 = vmor %vm769_vm14, %vm770_vm15  ;;  %vm784_vm10 = vweird.f32 %v1933_v20 }
 0x3fc   :  { %v766_v27 = vsub.f32 1.0, %v765_v25  ;;  %v790_v25 = vand.u32 2147483648, %v1933_v20 }
 0x3fe   :  { %v767_v32 = vmul.f32 %v1461_v21, %v766_v27  ;;  %v791_v38 = vor.u32 1.1754944e-38, %v790_v25 }
 0x400   :  { %v768_v40 = vadd.f32 %v1461_v21, %v767_v32 }
 0x401   :  { %v1937_v29 = vpop.eup %1462 }
 0x402   :  { %v780_v36 = vmul.f32 %v1937_v29, %v1933_v20  ;;  %v772_v57 = vsel %vm1948_vm2, %v1461_v21, %v768_v40  ;;  %vm785_vm8 = vweird.f32 %v1937_v29 }
 0x403   :  { %v777_v10 = vsel %vm774_vm5, %v776_v54, %v772_v57  ;;  %vm1965_vm11 = vmor %vm784_vm10, %vm785_vm8 }
 0x404   :  { %v922_v26 = vpop.xlane.xlu1 %921  ;;  %v781_v44 = vsub.f32 1.0, %v780_v36  ;;  %v1102_v17 = vmul.f32 %v1094_v60, %v777_v10  ;;  %v1095_v36 = vsub.f32 1.0, %v1079_v58 }
 0x405   :  { %1464 = vrcp.f32 %v922_v26  ;;  %v967_v46 = vand.u32 2147483648, %v922_v26  ;;  %v965_v49 = vand.u32 2147483647, %v922_v26  ;;  %vm961_vm3 = vweird.f32 %v922_v26 }
 0x406   :  { %v782_v62 = vmul.f32 %v1937_v29, %v781_v44 }
 0x407   :  { %v968_v33 = vor.u32 1.1754944e-38, %v967_v46  ;;  %vm966_vm6 = vcmp.eq.f32.partialorder %v965_v49, 8.507059e+37  ;;  %v706_v46 = vmul.f32 10.0, %v1849_v43 }
 0x408   :  { %v783_v18 = vadd.f32 %v1937_v29, %v782_v62 }
 0x409   :  { %v1383_v49 = vadd.f32 -5.0, %v706_v46 }
 0x40a   :  { %v787_v35 = vsel %vm1965_vm11, %v1937_v29, %v783_v18 }
 0x40b   :  { %v1465_v34 = vpop.eup %1464  ;;  %v1391_v52 = vmul.f32 -1.442695, %v1383_v49 }
 0x40c   :  { %v957_v16 = vmul.f32 %v1465_v34, %v922_v26  ;;  %v1942_v37 = vpop.xlane.xlu0 %924  ;;  %vm962_vm1 = vweird.f32 %v1465_v34 }
 0x40d   :  { %1466 = vrcp.f32 %v1942_v37  ;;  %vm963_vm4 = vmor %vm961_vm3, %vm962_vm1  ;;  %v982_v15 = vand.u32 2147483648, %v1942_v37  ;;  %v980_v21 = vand.u32 2147483647, %v1942_v37  ;;  %vm976_vm12 = vweird.f32 %v1942_v37 }
 0x40e   :  { %v958_v47 = vsub.f32 1.0, %v957_v16  ;;  %1468 = vpow2.f32 %v1392_v55  ;;  %v1067_v55 = vsub.f32 1.0, %v1878_v23 }
 0x40f   :  { %v983_v32 = vor.u32 1.1754944e-38, %v982_v15  ;;  %vm981_vm14 = vcmp.eq.f32.partialorder %v980_v21, 8.507059e+37  ;;  %1470 = vpow2.f32 %v1389_v30 }
 0x410   :  { %v959_v45 = vmul.f32 %v1465_v34, %v958_v47  ;;  %v1075_v60 = vmax.f32 %v1067_v55, 0.0 }
 0x412   :  { %v960_v59 = vadd.f32 %v1465_v34, %v959_v45  ;;  %278 = vrot.lane.b32.xlu1 %v1725_v50, %s1544_s3 }
 0x413   :  { %v1467_v48 = vpop.eup %1466 }
 0x414   :  { %v964_v42 = vsel %vm963_vm4, %v1465_v34, %v960_v59  ;;  %v972_v4 = vmul.f32 %v1467_v48, %v1942_v37  ;;  %vm977_vm9 = vweird.f32 %v1467_v48  ;;  %v1469_v34 = vpop.eup %1468 }
 0x415   :  { %v969_v8 = vsel %vm966_vm6, %v968_v33, %v964_v42  ;;  %vm978_vm13 = vmor %vm976_vm12, %vm977_vm9  ;;  %v747_v37 = vadd.f32 1.0, %v1469_v34  ;;  %v1471_v29 = vpop.eup %1470 }
 0x416   :  { %v970_v13 = vmul.f32 %v1867_v51, %v969_v8  ;;  %v973_v14 = vsub.f32 1.0, %v972_v4  ;;  %v788_v51 = vand.u32 2147483647, %v1933_v20  ;;  %v1978_v45 = vadd.f32 1.0, %v1471_v29 }
 0x417   :  { %1472 = vrcp.f32 %v747_v37  ;;  %v1083_v4 = vmin.f32 %v1075_v60, 1.0  ;;  %v850_v8 = vand.u32 2147483648, %v747_v37  ;;  %vm844_vm3 = vweird.f32 %v747_v37 }
 0x418   :  { %v974_v53 = vmul.f32 %v1467_v48, %v973_v14  ;;  %v1086_v50 = vmul.f32 %v1078_v41, %v970_v13  ;;  %vm789_vm15 = vcmp.eq.f32.partialorder %v788_v51, 8.507059e+37  ;;  %1474 = vrcp.f32 %v1978_v45 }
 0x419   :  { %v792_v40 = vsel %vm789_vm15, %v791_v38, %v787_v35  ;;  %v848_v18 = vand.u32 2147483647, %v747_v37  ;;  %v1099_v25 = vsub.f32 1.0, %v1083_v4  ;;  %v851_v51 = vor.u32 1.1754944e-38, %v850_v8 }
 0x41a   :  { %v975_v27 = vadd.f32 %v1467_v48, %v974_v53  ;;  %v1110_v28 = vadd.f32 %v1102_v17, %v1086_v50  ;;  %v1103_v41 = vmul.f32 %v1095_v36, %v792_v40  ;;  %v1064_v17 = vsub.f32 1.0, %v1876_v63 }
 0x41b   :  { %vm849_vm9 = vcmp.eq.f32.partialorder %v848_v18, 8.507059e+37 }
 0x41c   :  { %v979_v16 = vsel %vm978_vm13, %v1467_v48, %v975_v27  ;;  %1395 = vmatmul.msk.f32.vlgmr.msrb.gmra.mxu3 %vm500_vm0, %v1110_v28  ;;  %vm799_vm13 = vweird.f32 %v1978_v45 }
 0x41d   :  { %v984_v39 = vsel %vm981_vm14, %v983_v32, %v979_v16  ;;  %v1473_v9 = vpop.eup %1472  ;;  %v1072_v32 = vmax.f32 %v1064_v17, 0.0 }
 0x41e   :  { %v985_v20 = vmul.f32 %v1872_v56, %v984_v39  ;;  %v840_v3 = vmul.f32 %v1473_v9, %v747_v37  ;;  %v1982_v57 = vpop.eup %1474  ;;  %vm845_vm1 = vweird.f32 %v1473_v9 }
 0x41f   :  { %v283_v47 = vpop.permute.xlu0 %282  ;;  %v795_v2 = vmul.f32 %v1982_v57, %v1978_v45  ;;  %vm1987_vm4 = vmor %vm844_vm3, %vm845_vm1  ;;  %vm800_vm11 = vweird.f32 %v1982_v57 }
 0x420   :  { %1250 = vmatpush.msra.mxu3 %v283_v47  ;;  %v1087_v44 = vmul.f32 %v1079_v58, %v985_v20  ;;  %v841_v54 = vsub.f32 1.0, %v840_v3  ;;  %vm801_vm15 = vmor %vm799_vm13, %vm800_vm11 }
 0x421   :  { %v796_v14 = vsub.f32 1.0, %v795_v2 }
 0x422   :  { %v1111_v22 = vadd.f32 %v1103_v41, %v1087_v44  ;;  %v842_v48 = vmul.f32 %v1473_v9, %v841_v54  ;;  %v1080_v41 = vmin.f32 %v1072_v32, 1.0  ;;  %v805_v44 = vand.u32 2147483648, %v1978_v45 }
 0x423   :  { %v797_v30 = vmul.f32 %v1982_v57, %v796_v14  ;;  %v708_v14 = vmul.f32 10.0, %v1836_v31 }
 0x424   :  { %1396 = vmatmul.msk.f32.vlgmr.msra.gmra.mxu0 %vm500_vm0, %v1111_v22  ;;  %v843_v42 = vadd.f32 %v1473_v9, %v842_v48  ;;  %v806_v54 = vor.u32 1.1754944e-38, %v805_v44 }
 0x425   :  { %v798_v47 = vadd.f32 %v1982_v57, %v797_v30  ;;  %v1385_v31 = vadd.f32 -5.0, %v708_v14 }
 0x426   :  { %v847_v50 = vsel %vm1987_vm4, %v1473_v9, %v843_v42 }
 0x427   :  { %v852_v35 = vsel %vm849_vm9, %v851_v51, %v847_v50  ;;  %v802_v3 = vsel %vm801_vm15, %v1982_v57, %v798_v47  ;;  %v1066_v57 = vsub.f32 1.0, %v1897_v0 }
 0x428   :  { %v1107_v38 = vmul.f32 %v1099_v25, %v852_v35  ;;  %v1393_v35 = vmul.f32 -1.442695, %v1385_v31 }
 0x42c   :  { %v937_v56 = vpop.xlane.xlu2 %936 }
 0x42d   :  { %1476 = vrcp.f32 %v937_v56  ;;  %v1042_v5 = vand.u32 2147483648, %v937_v56  ;;  %v1040_v13 = vand.u32 2147483647, %v937_v56  ;;  %vm1036_vm5 = vweird.f32 %v937_v56 }
 0x42e   :  { %1478 = vpow2.f32 %v1391_v52 }
 0x42f   :  { %v1043_v26 = vor.u32 1.1754944e-38, %v1042_v5  ;;  %vm1041_vm8 = vcmp.eq.f32.partialorder %v1040_v13, 8.507059e+37 }
 0x433   :  { %v1477_v59 = vpop.eup %1476 }
 0x434   :  { %v1032_v43 = vmul.f32 %v1477_v59, %v937_v56  ;;  %v928_v62 = vpop.xlane.xlu2 %927  ;;  %v1479_v10 = vpop.eup %1478  ;;  %vm1037_vm2 = vweird.f32 %v1477_v59  ;;  %v1096_v56 = vsub.f32 1.0, %v1080_v41 }
 0x435   :  { %1480 = vrcp.f32 %v928_v62  ;;  %v1991_v21 = vadd.f32 1.0, %v1479_v10  ;;  %vm1038_vm6 = vmor %vm1036_vm5, %vm1037_vm2  ;;  %v997_v39 = vand.u32 2147483648, %v928_v62  ;;  %v995_v37 = vand.u32 2147483647, %v928_v62 }
 0x436   :  { %v1033_v33 = vsub.f32 1.0, %v1032_v43  ;;  %vm991_vm12 = vweird.f32 %v928_v62  ;;  %v1074_v10 = vmax.f32 %v1066_v57, 0.0 }
 0x437   :  { %1482 = vrcp.f32 %v1991_v21  ;;  %v998_v46 = vor.u32 1.1754944e-38, %v997_v39  ;;  %vm996_vm1 = vcmp.eq.f32.partialorder %v995_v37, 8.507059e+37  ;;  %vm829_vm5 = vweird.f32 %v1991_v21 }
 0x438   :  { %v1034_v23 = vmul.f32 %v1477_v59, %v1033_v33  ;;  %v1082_v18 = vmin.f32 %v1074_v10, 1.0  ;;  %v835_v0 = vand.u32 2147483648, %v1991_v21  ;;  %v833_v50 = vand.u32 2147483647, %v1991_v21 }
 0x43a   :  { %v1035_v15 = vadd.f32 %v1477_v59, %v1034_v23  ;;  %vm834_vm11 = vcmp.eq.f32.partialorder %v833_v50, 8.507059e+37 }
 0x43b   :  { %v1481_v53 = vpop.eup %1480 }
 0x43c   :  { %v1039_v27 = vsel %vm1038_vm6, %v1477_v59, %v1035_v15  ;;  %v987_v63 = vmul.f32 %v1481_v53, %v928_v62  ;;  %v286_v28 = vpop.permute.xlu2 %285  ;;  %vm992_vm10 = vweird.f32 %v1481_v53  ;;  %v705_v62 = vmul.f32 10.0, %v1825_v11 }
 0x43d   :  { %v1044_v34 = vsel %vm1041_vm8, %v1043_v26, %v1039_v27  ;;  %1273 = vmatpush.msrb.mxu0 %v286_v28  ;;  %vm993_vm14 = vmor %vm991_vm12, %vm992_vm10  ;;  %v1483_v49 = vpop.eup %1482  ;;  %v1098_v27 = vsub.f32 1.0, %v1082_v18  ;;  %v836_v28 = vor.u32 1.1754944e-38, %v835_v0 }
 0x43e   :  { %v1045_v36 = vmul.f32 %v1891_v19, %v1044_v34  ;;  %v988_v16 = vsub.f32 1.0, %v987_v63  ;;  %v803_v19 = vand.u32 2147483647, %v1978_v45  ;;  %v825_v48 = vmul.f32 %v1483_v49, %v1991_v21 }
 0x43f   :  { %vm830_vm3 = vweird.f32 %v1483_v49 }
 0x440   :  { %v989_v20 = vmul.f32 %v1481_v53, %v988_v16  ;;  %v1091_v40 = vmul.f32 %v1083_v4, %v1045_v36  ;;  %vm804_vm2 = vcmp.eq.f32.partialorder %v803_v19, 8.507059e+37  ;;  %v826_v33 = vsub.f32 1.0, %v825_v48  ;;  %vm2015_vm6 = vmor %vm829_vm5, %vm830_vm3 }
 0x441   :  { %v807_v59 = vsel %vm804_vm2, %v806_v54, %v802_v3  ;;  %v1382_v4 = vadd.f32 -5.0, %v705_v62  ;;  %v1065_v19 = vsub.f32 1.0, %v1925_v12 }
 0x442   :  { %v990_v22 = vadd.f32 %v1481_v53, %v989_v20  ;;  %v1115_v29 = vadd.f32 %v1107_v38, %v1091_v40  ;;  %v1104_v60 = vmul.f32 %v1096_v56, %v807_v59  ;;  %v827_v5 = vmul.f32 %v1483_v49, %v826_v33  ;;  %v940_v20 = vpop.xlane.xlu1 %939 }
 0x443   :  { %v1390_v23 = vmul.f32 -1.442695, %v1382_v4  ;;  %v1073_v56 = vmax.f32 %v1065_v19, 0.0  ;;  %v1068_v33 = vsub.f32 1.0, %v1886_v7  ;;  %v1055_v14 = vand.u32 2147483647, %v940_v20 }
 0x444   :  { %v994_v9 = vsel %vm993_vm14, %v1481_v53, %v990_v22  ;;  %1400 = vmatmul.msk.f32.vlgmr.msrb.gmra.mxu0 %vm500_vm0, %v1115_v29  ;;  %v828_v17 = vadd.f32 %v1483_v49, %v827_v5 }
 0x445   :  { %v999_v52 = vsel %vm996_vm1, %v998_v46, %v994_v9 }
 0x446   :  { %v1000_v55 = vmul.f32 %v1901_v61, %v999_v52  ;;  %v832_v51 = vsel %vm2015_vm6, %v1483_v49, %v828_v17 }
 0x447   :  { %v837_v36 = vsel %vm834_vm11, %v836_v28, %v832_v51 }
 0x448   :  { %v1088_v45 = vmul.f32 %v1080_v41, %v1000_v55  ;;  %v1106_v21 = vmul.f32 %v1098_v27, %v837_v36 }
 0x44a   :  { %v934_v43 = vpop.xlane.xlu0 %933  ;;  %v2008_v2 = vadd.f32 %v1104_v60, %v1088_v45  ;;  %v1081_v45 = vmin.f32 %v1073_v56, 1.0 }
 0x44b   :  { %1484 = vrcp.f32 %v934_v43  ;;  %v1027_v11 = vand.u32 2147483648, %v934_v43  ;;  %v1025_v15 = vand.u32 2147483647, %v934_v43  ;;  %vm1021_vm8 = vweird.f32 %v934_v43 }
 0x44c   :  { %1486 = vpow2.f32 %v1390_v23  ;;  %v1057_v23 = vand.u32 2147483648, %v940_v20 }
 0x44d   :  { %v1137_v42 = vpop.f32.mrf.mxu2  ;;  %v1028_v26 = vor.u32 1.1754944e-38, %v1027_v11  ;;  %vm1026_vm10 = vcmp.eq.f32.partialorder %v1025_v15, 8.507059e+37  ;;  %1488 = vpow2.f32 %v1393_v35 }
 0x44e   :  { %1301 = vst.msk [vmem:[#allocation4] sm:$0xff] %vm135_vm7, %v1137_v42  ;;  %v1058_v50 = vor.u32 1.1754944e-38, %v1057_v23 }
 0x451   :  { %v1485_v61 = vpop.eup %1484 }
 0x452   :  { %v1017_v8 = vmul.f32 %v1485_v61, %v934_v43  ;;  %vm1022_vm4 = vweird.f32 %v1485_v61  ;;  %v1487_v34 = vpop.eup %1486 }
 0x453   :  { %vm1023_vm9 = vmor %vm1021_vm8, %vm1022_vm4  ;;  %v745_v38 = vadd.f32 1.0, %v1487_v34  ;;  %v1489_v37 = vpop.eup %1488  ;;  %vm1051_vm4 = vweird.f32 %v940_v20 }
 0x454   :  { %v1018_v13 = vsub.f32 1.0, %v1017_v8  ;;  %v2024_v47 = vadd.f32 1.0, %v1489_v37  ;;  %v1097_v8 = vsub.f32 1.0, %v1081_v45 }
 0x455   :  { %1490 = vrcp.f32 %v745_v38  ;;  %vm814_vm13 = vweird.f32 %v745_v38  ;;  %v818_v57 = vand.u32 2147483647, %v745_v38  ;;  %v820_v42 = vand.u32 2147483648, %v745_v38 }
 0x456   :  { %v1019_v58 = vmul.f32 %v1485_v61, %v1018_v13  ;;  %1492 = vrcp.f32 %v940_v20  ;;  %v865_v28 = vand.u32 2147483648, %v2024_v47  ;;  %vm859_vm11 = vweird.f32 %v2024_v47 }
 0x457   :  { %1494 = vrcp.f32 %v2024_v47  ;;  %vm819_vm6 = vcmp.eq.f32.partialorder %v818_v57, 8.507059e+37  ;;  %v821_v17 = vor.u32 1.1754944e-38, %v820_v42 }
 0x458   :  { %v1020_v25 = vadd.f32 %v1485_v61, %v1019_v58  ;;  %v1076_v58 = vmax.f32 %v1068_v33, 0.0 }
 0x45a   :  { %v1024_v63 = vsel %vm1023_vm9, %v1485_v61, %v1020_v25  ;;  %vm1056_vm9 = vcmp.eq.f32.partialorder %v1055_v14, 8.507059e+37  ;;  %v1084_v27 = vmin.f32 %v1076_v58, 1.0 }
 0x45b   :  { %v1029_v30 = vsel %vm1026_vm10, %v1028_v26, %v1024_v63  ;;  %v1491_v40 = vpop.eup %1490 }
 0x45c   :  { %v1030_v32 = vmul.f32 %v1915_v1, %v1029_v30  ;;  %v1493_v41 = vpop.eup %1492  ;;  %v810_v44 = vmul.f32 %v1491_v40, %v745_v38  ;;  %vm815_vm12 = vweird.f32 %v1491_v40  ;;  %v863_v30 = vand.u32 2147483647, %v2024_v47 }
 0x45d   :  { %v1047_v22 = vmul.f32 %v1493_v41, %v940_v20  ;;  %v2028_v46 = vpop.eup %1494  ;;  %vm2033_vm15 = vmor %vm814_vm13, %vm815_vm12  ;;  %vm1052_vm1 = vweird.f32 %v1493_v41  ;;  %v1100_v35 = vsub.f32 1.0, %v1084_v27  ;;  %v289_v36 = vpop.permute.xlu0 %288 }
 0x45e   :  { %v1090_v16 = vmul.f32 %v1082_v18, %v1030_v32  ;;  %v811_v29 = vsub.f32 1.0, %v810_v44  ;;  %v855_v54 = vmul.f32 %v2028_v46, %v2024_v47  ;;  %vm1053_vm8 = vmor %vm1051_vm4, %vm1052_vm1  ;;  %vm860_vm10 = vweird.f32 %v2028_v46 }
 0x45f   :  { %v1048_v9 = vsub.f32 1.0, %v1047_v22  ;;  %vm861_vm12 = vmor %vm859_vm11, %vm860_vm10  ;;  %vm864_vm13 = vcmp.eq.f32.partialorder %v863_v30, 8.507059e+37 }
 0x460   :  { %v1114_v39 = vadd.f32 %v1106_v21, %v1090_v16  ;;  %v812_v3 = vmul.f32 %v1491_v40, %v811_v29  ;;  %v856_v62 = vsub.f32 1.0, %v855_v54  ;;  %v866_v21 = vor.u32 1.1754944e-38, %v865_v28 }
 0x461   :  { %v1049_v55 = vmul.f32 %v1493_v41, %v1048_v9 }
 0x462   :  { %1399 = vmatmul.msk.f32.vlgmr.msra.gmra.mxu3 %vm500_vm0, %v1114_v39  ;;  %v813_v48 = vadd.f32 %v1491_v40, %v812_v3  ;;  %v857_v18 = vmul.f32 %v2028_v46, %v856_v62 }
 0x463   :  { %v1050_v61 = vadd.f32 %v1493_v41, %v1049_v55 }
 0x464   :  { %v817_v10 = vsel %vm2033_vm15, %v1491_v40, %v813_v48  ;;  %v858_v51 = vadd.f32 %v2028_v46, %v857_v18 }
 0x465   :  { %v1054_v15 = vsel %vm1053_vm8, %v1493_v41, %v1050_v61  ;;  %v822_v53 = vsel %vm819_vm6, %v821_v17, %v817_v10 }
 0x466   :  { %v1105_v25 = vmul.f32 %v1097_v8, %v822_v53  ;;  %v1059_v26 = vsel %vm1056_vm9, %v1058_v50, %v1054_v15  ;;  %v862_v34 = vsel %vm861_vm12, %v2028_v46, %v858_v51 }
 0x467   :  { %v867_v38 = vsel %vm864_vm13, %v866_v21, %v862_v34 }
 0x468   :  { %v1108_v39 = vmul.f32 %v1100_v35, %v867_v38 }
 0x46c   :  { %v931_v1 = vpop.xlane.xlu1 %930 }
 0x46d   :  { %1496 = vrcp.f32 %v931_v1  ;;  %v1012_v60 = vand.u32 2147483648, %v931_v1  ;;  %v1010_v12 = vand.u32 2147483647, %v931_v1  ;;  %vm1006_vm2 = vweird.f32 %v931_v1 }
 0x46f   :  { %v1013_v13 = vor.u32 1.1754944e-38, %v1012_v60  ;;  %vm1011_vm5 = vcmp.eq.f32.partialorder %v1010_v12, 8.507059e+37 }
 0x473   :  { %v1497_v49 = vpop.eup %1496 }
 0x474   :  { %v1002_v52 = vmul.f32 %v1497_v49, %v931_v1  ;;  %vm1007_vm14 = vweird.f32 %v1497_v49 }
 0x475   :  { %vm1008_vm3 = vmor %vm1006_vm2, %vm1007_vm14 }
 0x476   :  { %v1003_v59 = vsub.f32 1.0, %v1002_v52 }
 0x478   :  { %v1004_v43 = vmul.f32 %v1497_v49, %v1003_v59 }
 0x47a   :  { %v1005_v5 = vadd.f32 %v1497_v49, %v1004_v43 }
 0x47c   :  { %v1009_v7 = vsel %vm1008_vm3, %v1497_v49, %v1005_v5 }
 0x47d   :  { %v1014_v11 = vsel %vm1011_vm5, %v1013_v13, %v1009_v7 }
 0x47e   :  { %v1015_v0 = vmul.f32 %v1929_v6, %v1014_v11  ;;  %v1060_v6 = vmul.f32 %v1895_v24, %v1059_v26 }
 0x480   :  { %v1089_v31 = vmul.f32 %v1081_v45, %v1015_v0  ;;  %v1092_v16 = vmul.f32 %v1084_v27, %v1060_v6 }
 0x482   :  { %v1113_v63 = vadd.f32 %v1105_v25, %v1089_v31  ;;  %v1116_v20 = vadd.f32 %v1108_v39, %v1092_v16 }
 0x484   :  { %v279_v32 = vpop.permute.xlu1 %278  ;;  %1398 = vmatmul.msk.f32.vlgmr.msra.gmra.mxu2 %vm500_vm0, %v1113_v63 }
 0x485   :  { %1204 = vmatpush.msra.mxu1 %v279_v32 }
 0x486   :  { %1397 = vmatmul.msk.f32.vlgmr.msra.gmra.mxu1 %vm500_vm0, %v2008_v2 }
 0x487   :  { %1296 = vmatpush.msrb.mxu1 %v289_v36 }
 0x48e   :  { %1401 = vmatmul.msk.f32.vlgmr.msrb.gmra.mxu1 %vm500_vm0, %v1116_v20 }
 0x49f   :  { %v1160_v24 = vpop.f32.mrf.mxu3 }
 0x4a0   :  { %1302 = vst.msk [vmem:[#allocation4 + $0x8] sm:$0xff] %vm135_vm7, %v1160_v24 }
 0x4a1   :  { %v1183_v37 = vpop.f32.mrf.mxu0 }
 0x4a2   :  { %1303 = vst.msk [vmem:[#allocation4 + $0x10] sm:$0xff] %vm135_vm7, %v1183_v37 }
 0x4c1   :  { %v1275_v40 = vpop.f32.mrf.mxu0 }
 0x4c2   :  { %1307 = vst.msk [vmem:[#allocation4 + $0x30] sm:$0xff] %vm135_vm7, %v1275_v40 }
 0x4e5   :  { %v1252_v47 = vpop.f32.mrf.mxu3 }
 0x4e6   :  { %1306 = vst.msk [vmem:[#allocation4 + $0x28] sm:$0xff] %vm135_vm7, %v1252_v47 }
 0x503   :  { %v1206_v2 = vpop.f32.mrf.mxu1 }
 0x504   :  { %1304 = vst.msk [vmem:[#allocation4 + $0x18] sm:$0xff] %vm135_vm7, %v1206_v2 }
 0x507   :  { %v1229_v41 = vpop.f32.mrf.mxu2 }
 0x508   :  { %1305 = vst.msk [vmem:[#allocation4 + $0x20] sm:$0xff] %vm135_vm7, %v1229_v41 }
 0x50b   :  { %v1298_v44 = vpop.f32.mrf.mxu1 }
 0x50c   :  { %1308 = vst.msk [vmem:[#allocation4 + $0x38] sm:$0xff] %vm135_vm7, %v1298_v44 }
 0x50d   :  { %1321 = dma.vmem_to_hbm [thread:$0]  %s1314_s21, 1024, %s1316_s26, [#allocation5], %s1546_s27, %s1546_s27, %s1547_s0  }
 0x50e   :  { %1536 = dma.done.wait [#allocation5], 1024  }
 0x50f   :  { %1537 = vsyncadd [#allocation5], 4294966272 }
 0x510   :  { %1326 = vsyncpa [#allocation5], 1 }

</bundles_post_ra>
